<compile_context>
chip_gen: v7x
topology: tpu7x:2x2x1
jax: 0.10.0
libtpu: 0.0.40
codegen_flags: <defaults>
</compile_context>

<pallas_src>
import functools

import jax
import jax.numpy as jnp
from jax import lax
from jax.experimental import pallas as pl
from jax.experimental.pallas import tpu as pltpu

IN_FEATURES = 32 * 32 * 3  # 3072


def _fc_ae_kernel(x_ref, w1_ref, b1_ref, w2_ref, b2_ref, o_ref, h_ref):
    # x_ref : (TB, 3072)  bf16   flattened input tile (resident across N tiles)
    # w1_ref: (S, 3072)   bf16   input_transform.weight (PyTorch layout, NOT transposed)
    # b1_ref: (1, S)      f32
    # w2_ref: (TN, S)     bf16   d3.weight N-tile        (PyTorch layout, NOT transposed)
    # b2_ref: (1, TN)     f32
    # o_ref : (TB, TN)    f32
    # h_ref : (TB, S)     bf16   persistent hidden-activation scratch

    # hidden = GELU(x @ W1^T + b1): compute once per batch tile (j == 0), reuse for all N tiles.
    @pl.when(pl.program_id(1) == 0)
    def _():
        h = lax.dot_general(
            x_ref[...], w1_ref[...],
            dimension_numbers=(((1,), (1,)), ((), ())),   # trans-B matmul, MXU-native
            preferred_element_type=jnp.float32,
        ) + b1_ref[...]
        # exact GELU (PyTorch nn.GELU() default): 0.5 * x * (1 + erf(x / sqrt(2)))
        h = 0.5 * h * (1.0 + lax.erf(h * jnp.float32(0.7071067811865476)))
        h_ref[...] = h.astype(h_ref.dtype)

    # out tile = hidden @ W2[j*TN:(j+1)*TN, :]^T + b2 tile
    out = lax.dot_general(
        h_ref[...], w2_ref[...],
        dimension_numbers=(((1,), (1,)), ((), ())),
        preferred_element_type=jnp.float32,
    ) + b2_ref[...]
    o_ref[...] = out.astype(o_ref.dtype)


def prepare_params(w1, b1, w2, b2):
    """One-time (load-time) prep: bf16 weights in PyTorch layout, f32 row-vector biases."""
    return (
        w1.astype(jnp.bfloat16),                 # (S, 3072)
        b1.reshape(1, -1).astype(jnp.float32),   # (1, S)
        w2.astype(jnp.bfloat16),                 # (3072, S)
        b2.reshape(1, -1).astype(jnp.float32),   # (1, 3072)
    )


@functools.partial(jax.jit, static_argnames=("tile_b", "tile_n"))
def fc_autoencoder_forward(x_nchw, params, *, tile_b=256, tile_n=1024):
    """x_nchw: (B, 3, 32, 32).  params: output of prepare_params (bf16 weights, f32 biases)."""
    w1, b1, w2, b2 = params
    S = w1.shape[0]
    B = x_nchw.shape[0]
    x = x_nchw.reshape(B, IN_FEATURES).astype(jnp.bfloat16)   # row-major == torch.flatten

    tb = min(tile_b, B)
    tn = min(tile_n, IN_FEATURES)
    grid = (pl.cdiv(B, tb), pl.cdiv(IN_FEATURES, tn))

    # TODO(synk): for very large hidden sizes (S >~ 4k) W1 should also be streamed along S
    # instead of being held fully resident in VMEM.
    grid_spec = pltpu.PrefetchScalarGridSpec(
        num_scalar_prefetch=0,
        grid=grid,
        in_specs=[
            pl.BlockSpec((tb, IN_FEATURES), lambda i, j: (i, 0)),   # x: constant over N tiles
            pl.BlockSpec((S, IN_FEATURES), lambda i, j: (0, 0)),    # W1: fully VMEM-resident
            pl.BlockSpec((1, S), lambda i, j: (0, 0)),              # b1
            pl.BlockSpec((tn, S), lambda i, j: (j, 0)),             # W2: streamed N tiles
            pl.BlockSpec((1, tn), lambda i, j: (0, j)),             # b2: streamed N tiles
        ],
        out_specs=pl.BlockSpec((tb, tn), lambda i, j: (i, j)),
        scratch_shapes=[pltpu.VMEM((tb, S), jnp.bfloat16)],
    )

    return pl.pallas_call(
        _fc_ae_kernel,
        out_shape=jax.ShapeDtypeStruct((B, IN_FEATURES), jnp.float32),
        grid_spec=grid_spec,
        compiler_params=pltpu.CompilerParams(
            dimension_semantics=("parallel", "arbitrary")),
    )(x, w1, b1, w2, b2)


def _reference_forward(x_nchw, params):
    """Pure-JAX reference mirroring the kernel's bf16 storage / f32 accumulation."""
    w1, b1, w2, b2 = params
    x = x_nchw.reshape(x_nchw.shape[0], -1).astype(jnp.bfloat16)
    h = jnp.dot(x, w1.T, preferred_element_type=jnp.float32) + b1
    h = jax.nn.gelu(h, approximate=False)
    h = h.astype(jnp.bfloat16)
    return jnp.dot(h, w2.T, preferred_element_type=jnp.float32) + b2


if __name__ == "__main__":
    starting_size = 256   # hidden width S (divisible by 4 per the unused LayerNorm in __init__)
    batch = 2

    key = jax.random.PRNGKey(0)
    kx, kw1, kb1, kw2, kb2 = jax.random.split(key, 5)

    # deterministic synthetic parameters (PyTorch nn.Linear shape conventions)
    x = jax.random.normal(kx, (batch, 3, 32, 32), dtype=jnp.float32)
    w1 = jax.random.normal(kw1, (starting_size, IN_FEATURES), dtype=jnp.float32) * 0.02
    b1 = jax.random.normal(kb1, (starting_size,), dtype=jnp.float32) * 0.02
    w2 = jax.random.normal(kw2, (IN_FEATURES, starting_size), dtype=jnp.float32) * 0.02
    b2 = jax.random.normal(kb2, (IN_FEATURES,), dtype=jnp.float32) * 0.02

    params = prepare_params(w1, b1, w2, b2)   # one-time cast/reshape, NOT on the forward path

    out = fc_autoencoder_forward(x, params)
    out = jax.block_until_ready(out)

    ref = _reference_forward(x, params)
    assert out.shape == (batch, IN_FEATURES), out.shape
    max_err = float(jnp.max(jnp.abs(out - ref)))
    assert jnp.allclose(out, ref, atol=1e-2, rtol=1e-2), max_err

    print("KERNEL_OK")
</pallas_src>

<mosaic_0001>
module attributes {stable_mosaic.version = 11 : i64} {
  func.func @_fc_ae_kernel(%arg0: i32, %arg1: i32, %arg2: memref<2x3072xbf16, #tpu.memory_space<vmem>>, %arg3: memref<256x3072xbf16, #tpu.memory_space<vmem>>, %arg4: memref<1x256xf32, #tpu.memory_space<vmem>>, %arg5: memref<1024x256xbf16, #tpu.memory_space<vmem>>, %arg6: memref<1x1024xf32, #tpu.memory_space<vmem>>, %arg7: memref<2x1024xf32, #tpu.memory_space<vmem>>, %arg8: memref<2x256xbf16, #tpu.memory_space<vmem>>) attributes {dimension_semantics = [#tpu.dimension_semantics<parallel>, #tpu.dimension_semantics<arbitrary>], iteration_bounds = array<i64: 1, 3>, scalar_prefetch = 0 : i64, scratch_operands = 1 : i64, tpu.core_type = #tpu.core_type<tc>, window_params = [{transform_indices = @transform_0, window_bounds = array<i64: 2, 3072>}, {pipeline_mode = #tpu.pipeline_mode<synchronous>, transform_indices = @transform_1, window_bounds = array<i64: 256, 3072>}, {pipeline_mode = #tpu.pipeline_mode<synchronous>, transform_indices = @transform_2, window_bounds = array<i64: 1, 256>}, {transform_indices = @transform_3, window_bounds = array<i64: 1024, 256>}, {transform_indices = @transform_4, window_bounds = array<i64: 1, 1024>}, {transform_indices = @transform_5, window_bounds = array<i64: 2, 1024>}]} {
    %c0_i32 = arith.constant 0 : i32
    %0 = arith.cmpi eq, %arg1, %c0_i32 : i32
    %1 = arith.extui %0 : i1 to i32
    %c0_i32_0 = arith.constant 0 : i32
    %2 = arith.cmpi ne, %1, %c0_i32_0 : i32
    scf.if %2 {
      %c0_8 = arith.constant 0 : index
      %c0_9 = arith.constant 0 : index
      %10 = vector.load %arg2[%c0_8, %c0_9] : memref<2x3072xbf16, #tpu.memory_space<vmem>>, vector<2x3072xbf16>
      %c0_10 = arith.constant 0 : index
      %c0_11 = arith.constant 0 : index
      %11 = vector.load %arg3[%c0_10, %c0_11] : memref<256x3072xbf16, #tpu.memory_space<vmem>>, vector<256x3072xbf16>
      %cst_12 = arith.constant dense<0.000000e+00> : vector<2x256xf32>
      %12 = tpu.matmul %10, %11, %cst_12 {dimension_numbers = #tpu.dot_dimension_numbers<[1], [1], [0], [0], [0, 0, 1, 0], [], []>} : vector<2x3072xbf16>, vector<256x3072xbf16>, vector<2x256xf32> -> vector<2x256xf32>
      %c0_13 = arith.constant 0 : index
      %c0_14 = arith.constant 0 : index
      %13 = vector.load %arg4[%c0_13, %c0_14] : memref<1x256xf32, #tpu.memory_space<vmem>>, vector<1x256xf32>
      %14 = vector.broadcast %13 : vector<1x256xf32> to vector<2x256xf32>
      %15 = arith.addf %12, %14 : vector<2x256xf32>
      %cst_15 = arith.constant 5.000000e-01 : f32
      %16 = vector.broadcast %cst_15 : f32 to vector<2x256xf32>
      %17 = arith.mulf %16, %15 : vector<2x256xf32>
      %cst_16 = arith.constant 0.707106769 : f32
      %18 = vector.broadcast %cst_16 : f32 to vector<2x256xf32>
      %19 = arith.mulf %15, %18 : vector<2x256xf32>
      %20 = math.erf %19 : vector<2x256xf32>
      %cst_17 = arith.constant 1.000000e+00 : f32
      %21 = vector.broadcast %cst_17 : f32 to vector<2x256xf32>
      %22 = arith.addf %21, %20 : vector<2x256xf32>
      %23 = arith.mulf %17, %22 : vector<2x256xf32>
      %24 = arith.truncf %23 : vector<2x256xf32> to vector<2x256xbf16>
      %c0_18 = arith.constant 0 : index
      %c0_19 = arith.constant 0 : index
      %25 = vector.load %arg8[%c0_18, %c0_19] : memref<2x256xbf16, #tpu.memory_space<vmem>>, vector<2x256xbf16>
      tpu.vector_store %arg8[%c0_18, %c0_19], %24 {strides = array<i32>} : memref<2x256xbf16, #tpu.memory_space<vmem>>, vector<2x256xbf16>,
    } else {
    }
    %c0 = arith.constant 0 : index
    %c0_1 = arith.constant 0 : index
    %3 = vector.load %arg8[%c0, %c0_1] : memref<2x256xbf16, #tpu.memory_space<vmem>>, vector<2x256xbf16>
    %c0_2 = arith.constant 0 : index
    %c0_3 = arith.constant 0 : index
    %4 = vector.load %arg5[%c0_2, %c0_3] : memref<1024x256xbf16, #tpu.memory_space<vmem>>, vector<1024x256xbf16>
    %cst = arith.constant dense<0.000000e+00> : vector<2x1024xf32>
    %5 = tpu.matmul %3, %4, %cst {dimension_numbers = #tpu.dot_dimension_numbers<[1], [1], [0], [0], [0, 0, 1, 0], [], []>} : vector<2x256xbf16>, vector<1024x256xbf16>, vector<2x1024xf32> -> vector<2x1024xf32>
    %c0_4 = arith.constant 0 : index
    %c0_5 = arith.constant 0 : index
    %6 = vector.load %arg6[%c0_4, %c0_5] : memref<1x1024xf32, #tpu.memory_space<vmem>>, vector<1x1024xf32>
    %7 = vector.broadcast %6 : vector<1x1024xf32> to vector<2x1024xf32>
    %8 = arith.addf %5, %7 : vector<2x1024xf32>
    %c0_6 = arith.constant 0 : index
    %c0_7 = arith.constant 0 : index
    %9 = vector.load %arg7[%c0_6, %c0_7] : memref<2x1024xf32, #tpu.memory_space<vmem>>, vector<2x1024xf32>
    tpu.vector_store %arg7[%c0_6, %c0_7], %8 {strides = array<i32>} : memref<2x1024xf32, #tpu.memory_space<vmem>>, vector<2x1024xf32>,
    return
  }
  func.func @transform_0(%arg0: i32, %arg1: i32) -> (i32, i32) {
    %c0_i32 = arith.constant 0 : i32
    %c0_i32_0 = arith.constant 0 : i32
    return %arg0, %c0_i32 : i32, i32
  }
  func.func @transform_1(%arg0: i32, %arg1: i32) -> (i32, i32) {
    %c0_i32 = arith.constant 0 : i32
    %c0_i32_0 = arith.constant 0 : i32
    %c0_i32_1 = arith.constant 0 : i32
    return %c0_i32, %c0_i32_0 : i32, i32
  }
  func.func @transform_2(%arg0: i32, %arg1: i32) -> (i32, i32) {
    %c0_i32 = arith.constant 0 : i32
    %c0_i32_0 = arith.constant 0 : i32
    %c0_i32_1 = arith.constant 0 : i32
    return %c0_i32, %c0_i32_0 : i32, i32
  }
  func.func @transform_3(%arg0: i32, %arg1: i32) -> (i32, i32) {
    %c0_i32 = arith.constant 0 : i32
    %c0_i32_0 = arith.constant 0 : i32
    return %arg1, %c0_i32 : i32, i32
  }
  func.func @transform_4(%arg0: i32, %arg1: i32) -> (i32, i32) {
    %c0_i32 = arith.constant 0 : i32
    %c0_i32_0 = arith.constant 0 : i32
    return %c0_i32, %arg1 : i32, i32
  }
  func.func @transform_5(%arg0: i32, %arg1: i32) -> (i32, i32) {
    %c0_i32 = arith.constant 0 : i32
    return %arg0, %arg1 : i32, i32
  }
}

</mosaic_0001>

<bundles_post_ra>
// kernel: fc_autoencoder_forward.1
= control target key start
LH: loop header
LB: loop body
LE: loop exit
PB: predicated region body
PF: predicated region fallthrough
CT: control target
= control target key end

     0   :  { %s6278_s0 = inlined_call_operand.vmem [shape: bf16[2,3072], index: 0, kind: input, shape index: {}]   ;;  %s6279_s1 = inlined_call_operand.hbm [shape: bf16[256,3072], index: 1, kind: input, shape index: {}]   ;;  %s6280_s2 = inlined_call_operand.hbm [shape: f32[1,256], index: 2, kind: input, shape index: {}]   ;;  %s6281_s3 = inlined_call_operand.hbm [shape: bf16[3072,256], index: 3, kind: input, shape index: {}]   ;;  %s6282_s4 = inlined_call_operand.hbm [shape: f32[1,3072], index: 4, kind: input, shape index: {}]   ;;  %s6283_s5 = inlined_call_operand.hbm [shape: f32[2,3072], index: 5, kind: output, shape index: {}]  }
   0x1   :  { %6297 = sst [smem:[#allocation18_spill]] %s6279_s1 }
   0x2   :  { %6298 = sst [smem:[#allocation19_spill]] %s6281_s3 }
   0x3   :  { %6299 = sst [smem:[#allocation20_spill]] %s6283_s5 }
   0x4   :  { %10 = vsyncpa [#allocation4], 0 }
   0x5   :  { %11 = vsyncpa [#allocation7], 0 }
   0x6   :  { %12 = vsyncpa [#allocation5], 0 }
   0x7   :  { %14 = vsyncpa [#allocation5 + $0x1], 0  ;;  %s5691_s18 = smov 0   ;;  %s5693_s19 = smov 0  }
   0x8   :  { %s5695_s20 = smov 0   ;;  %s5697_s21 = smov 0  }
   0x9   :  { %s5699_s22 = smov 0   ;;  %s5701_s23 = smov 0  }
   0xa LB: > { %6300 = sst [smem:[#allocation15_spill]] %s5627_s18  ;;  %s5722_s24 = sadd.s32 4294967295, %s5647_s23   ;;  %s5647_s23 = sphi %s5701_s23, %s20_s23   ;;  %s5643_s22 = sphi %s5699_s22, %s6335_s22   ;;  %s5639_s21 = sphi %s5697_s21, %s6334_s21   ;;  %s5635_s20 = sphi %s5695_s20, %s6333_s20   ;;  %s5631_s19 = sphi %s5693_s19, %s6332_s19   ;;  %s5627_s18 = sphi %s5691_s18, %s6331_s18  }
   0xb   : > { %s4557_s25 = sadd.s32 4294967294, %s5647_s23   ;;  %p114_p0 = scmp.ne.s32.totalorder %s5635_s20, %s5631_s19 }
   0xc   : > { %p115_p1 = scmp.eq.s32.totalorder %s5647_s23, 0  ;;  %p120_p2 = scmp.ne.s32.totalorder %s5631_s19, %s5627_s18 }
   0xd   : > { %p6284_p3 = scmp.eq.s32.totalorder %s5722_s24, 0  ;;  %p172_p4 = scmp.eq.s32.totalorder %s5722_s24, 2 }
   0xe   : > { %p5733_p5 = por %p115_p1, %p114_p0  ;;  %p178_p6 = scmp.eq.s32.totalorder %s4557_s25, 2 }
   0xf   : > { %p5739_p7 = por %p6284_p3, %p120_p2  ;;  %p5743_p8 = por %p172_p4, %p114_p0 }
  0x10   : > { %p5747_p9 = por %p178_p6, %p120_p2  ;;  %p4558_p10 = scmp.ge.s32.totalorder %s5647_s23, 1 }
  0x11   : > { %s6302_s28 = scalar_select %p5739_p7, 1, 0 }
  0x12   : > { %s6303_s29 = scalar_select %p5743_p8, 1, 0 }
  0x13   : > { %s6305_s30 = scalar_select %p5747_p9, 1, 0 }
  0x14   : > { %6304 = sst [smem:[#allocation16_spill]] %s6303_s29  ;;  %p185_p11 = scmp.lt.s32.totalorder %s5647_s23, 4 }
  0x15   : > { %6306 = sst [smem:[#allocation17_spill]] %s6305_s30  ;;  %s5649_s7 = smov [#allocation3]  }
  0x16   : > { %p5753_p12 = pnand %p4558_p10, %p185_p11  ;;  %s204_s8 = sshll.u32 %s5649_s7, 4  ;;  %s5757_s8 = int_to_ptr.vmem [resolvable:$true] %s204_s8 }
  0x17   : > { %p5179_p0 = scmp.lt.s32.totalorder %s5647_s23, 3  ;;  %s29_s11 = sadd.s32 1, %s5643_s22 }
  0x18   : > { %s6307_s6 = scalar_select %p5753_p12, 1, 0 }
  0x19   : > { %p5159_p13 = pneg %p5753_p12  ;;  %p5770_p2 = pnand %p5179_p0, %p5733_p5 }
  0x1a   : > { %p5775_p4 = scmp.ge.s32.totalorder %s29_s11, 3  ;;  %s6311_s1 = sld [smem:[#allocation18_spill]] }
  0x1b   : > { %p5764_p1 = pnand %p5159_p13, %p6284_p3 }
  0x1c   : > { %s6309_s10 = scalar_select %p5770_p2, 1, 0 }
  0x1d   : > { %p6293_p10 = pneg %p5764_p1 }
  0x20   : > { %s5441_s15 = scalar_lea.hbm %s6311_s1, 49152 }
  0x21   : > { %p5442_p6 = scmp.ne.s32.totalorder %s6311_s1, %s5441_s15  ;;  %p5448_p13 = scmp.lt.u32.totalorder %s5441_s15, %s6311_s1 }
  0x23   : > { %p5444_p5 = pnand %p6293_p10, %p5442_p6 }
  0x25   : > { %p5445_p11 = pneg %p5444_p5 }
  0x27   : > { %p5450_p0 = pnand %p5448_p13, %p5445_p11 }
  0x29   : > { %5453 = shalt.err (!%p5450_p0)
}
  0x2a   : > { %s5454_s7 = scalar_lea.vmem %s5757_s8, 49152  ;;  %p5462_p7 = scmp.lt.s32.totalorder %s5757_s8, %s5757_s8 }
  0x2b   : > { %p5455_p3 = scmp.ne.s32.totalorder %s5757_s8, %s5454_s7  ;;  %p5463_p6 = scmp.lt.s32.totalorder %s5454_s7, %s5454_s7 }
  0x2d   : > { %p5457_p9 = pnand %p5455_p3, %p6293_p10  ;;  %p5464_p5 = por %p5463_p6, %p5462_p7 }
  0x2f   : > { %p5458_p8 = pneg %p5457_p9 }
  0x31   : > { %p5465_p12 = pnand %p5464_p5, %p5458_p8 }
  0x33   : > { %5468 = shalt.err (!%p5465_p12)
}
  0x34   : > { %s5650_s13 = smov 1536   ;;  %s5651_s14 = smov 96  }
  0x35   : > { %5162 = dma.hbm_to_vmem [thread:$0]  (!%p5764_p1), %s6311_s1, 49152, %s5757_s8, [#allocation4], %s5650_s13, %s5650_s13, %s5651_s14  }
  0x36   : > { %s229_s17 = sand.u32 1, %s5647_s23   ;;  %s6337_s11 = smov (%p5775_p4, %s29_s11), 0 }
  0x37   : > { %s231_s25 = sand.u32 1, %s5635_s20   ;;  %s104_s27 = ssub.s32 %s5643_s22, %s6337_s11 }
  0x38   : > { %s4563_s7 = sshll.u32 %s231_s25, 10  ;;  %p105_p3 = scmp.eq.s32.totalorder %s104_s27, 0 }
  0x39   : > { %s5098_s26 = sshll.u32 %s5643_s22, 14  ;;  %s233_s30 = scalar_lea.vmem [#allocation8], %s4563_s7 }
  0x3a   : > { %s241_s18 = sshll.u32 %s233_s30, 4  ;;  %s6312_s5 = sadd.s32 1, %s5635_s20  ;;  %s5827_s18 = int_to_ptr.vmem [resolvable:$true] %s241_s18 }
  0x3b   : > { %s5820_s29 = scalar_select %p105_p3, %s5635_s20, %s6312_s5  }
  0x3c   : > { %s6313_s3 = sld [smem:[#allocation19_spill]]  ;;  %s5829_s12 = scalar_lea.sflag [#allocation4], %s229_s17 }
  0x3d   : > { %p6294_p8 = pneg %p5770_p2 }
  0x42   : > { %s5825_s13 = scalar_lea.hbm %s6313_s3, %s5098_s26  ;;  %s5474_s26 = scalar_lea.hbm %s6313_s3, 49152 }
  0x43   : > { %s5469_s14 = scalar_lea.hbm %s5825_s13, 16384  ;;  %p5475_p4 = scmp.lt.u32.totalorder %s5825_s13, %s6313_s3 }
  0x44   : > { %p5470_p7 = scmp.ne.s32.totalorder %s5825_s13, %s5469_s14  ;;  %p5476_p11 = scmp.lt.u32.totalorder %s5474_s26, %s5469_s14 }
  0x45   : > { %p5478_p0 = scmp.lt.u32.totalorder %s5469_s14, %s5825_s13 }
  0x46   : > { %p5472_p9 = pnand %p6294_p8, %p5470_p7  ;;  %p5477_p13 = por %p5476_p11, %p5475_p4 }
  0x48   : > { %p5473_p12 = pneg %p5472_p9  ;;  %p5479_p6 = por %p5478_p0, %p5477_p13 }
  0x4a   : > { %p5480_p5 = pnand %p5479_p6, %p5473_p12 }
  0x4c   : > { %5483 = shalt.err (!%p5480_p5)
}
  0x4d   : > { %s5484_s17 = scalar_lea.vmem %s5827_s18, 16384  ;;  %s5652_s7 = smov [#allocation8]  }
  0x4e   : > { %p5485_p3 = scmp.ne.s32.totalorder %s5827_s18, %s5484_s17  ;;  %s5489_s15 = sshll.u32 %s5652_s7, 4  ;;  %s5490_s15 = int_to_ptr.vmem [resolvable:$false] %s5489_s15 }
  0x4f   : > { %s5491_s8 = scalar_lea.vmem %s5490_s15, 32768  ;;  %p5492_p10 = scmp.lt.s32.totalorder %s5827_s18, %s5490_s15 }
  0x50   : > { %p5487_p7 = pnand %p5485_p3, %p6294_p8  ;;  %p5493_p4 = scmp.lt.s32.totalorder %s5491_s8, %s5484_s17 }
  0x52   : > { %p5488_p9 = pneg %p5487_p7  ;;  %p5494_p11 = por %p5493_p4, %p5492_p10 }
  0x54   : > { %p5495_p13 = pnand %p5494_p11, %p5488_p9 }
  0x56   : > { %5498 = shalt.err (!%p5495_p13)
}
  0x57   : > { %s5653_s14 = smov 128   ;;  %s5654_s5 = smov 8  }
  0x58   : > { %5169 = dma.hbm_to_vmem [thread:$0]  (!%p5770_p2), %s5825_s13, 16384, %s5827_s18, %s5829_s12, %s5653_s14, %s5653_s14, %s5654_s5  }
  0x59   : > { %s4567_s30 = sshll.u32 %s231_s25, 3  ;;  %s5655_s26 = smov [#allocation6]  }
  0x5a   : > { %s218_s16 = sshll.u32 %s5655_s26, 4  ;;  %s5099_s27 = sshll.u32 %s5643_s22, 7  ;;  %s219_s16 = int_to_ptr.vmem [resolvable:$true] %s218_s16 }
  0x5b   : > { %s5499_s15 = scalar_lea.hbm %s6280_s2, 32  ;;  %p6314_p12 = pneg %p5764_p1 }
  0x5c   : > { %p5500_p10 = scmp.ne.s32.totalorder %s6280_s2, %s5499_s15  ;;  %p5506_p5 = scmp.lt.u32.totalorder %s5499_s15, %s6280_s2 }
  0x5e   : > { %p5502_p0 = pnand %p5500_p10, %p6314_p12 }
  0x60   : > { %p5503_p6 = pneg %p5502_p0 }
  0x62   : > { %p5508_p3 = pnand %p5506_p5, %p5503_p6 }
  0x64   : > { %5511 = shalt.err (!%p5508_p3)
}
  0x65   : > { %s5512_s25 = scalar_lea.vmem %s219_s16, 32  ;;  %p6315_p9 = pmov %p6314_p12 }
  0x66   : > { %p5513_p7 = scmp.ne.s32.totalorder %s219_s16, %s5512_s25  ;;  %p5520_p13 = scmp.lt.s32.totalorder %s219_s16, %s219_s16 }
  0x67   : > { %p5521_p8 = scmp.lt.s32.totalorder %s5512_s25, %s5512_s25 }
  0x68   : > { %p5515_p4 = pnand %p5513_p7, %p6315_p9 }
  0x69   : > { %p5522_p2 = por %p5521_p8, %p5520_p13 }
  0x6a   : > { %p5516_p11 = pneg %p5515_p4 }
  0x6c   : > { %p5523_p10 = pnand %p5522_p2, %p5516_p11 }
  0x6e   : > { %5526 = shalt.err (!%p5523_p10)
}
  0x6f   : > { %5165 = dma.hbm_to_vmem [thread:$0]  (!%p5764_p1), %s6280_s2, 32, %s219_s16, [#allocation7]  }
  0x70   : > { %s5883_s5 = scalar_lea.hbm %s6282_s4, %s5099_s27  ;;  %s255_s26 = scalar_lea.vmem [#allocation9], %s4567_s30 }
  0x71   : > { %s263_s17 = sshll.u32 %s255_s26, 4  ;;  %s5527_s7 = scalar_lea.hbm %s5883_s5, 128  ;;  %s264_s17 = int_to_ptr.vmem [resolvable:$true] %s263_s17 }
  0x72   : > { %p5528_p2 = scmp.ne.s32.totalorder %s5883_s5, %s5527_s7  ;;  %p6316_p8 = scmp.ne.s32.totalorder %s6309_s10, 0 }
  0x73   : > { %s5532_s15 = scalar_lea.hbm %s6282_s4, 384  ;;  %p5533_p1 = scmp.lt.u32.totalorder %s5883_s5, %s6282_s4 }
  0x74   : > { %p6317_p12 = pneg %p6316_p8  ;;  %p5534_p5 = scmp.lt.u32.totalorder %s5532_s15, %s5527_s7 }
  0x75   : > { %p5536_p7 = scmp.lt.u32.totalorder %s5527_s7, %s5883_s5 }
  0x76   : > { %p5530_p0 = pnand %p5528_p2, %p6317_p12  ;;  %p5535_p3 = por %p5534_p5, %p5533_p1 }
  0x78   : > { %p5531_p6 = pneg %p5530_p0  ;;  %p5537_p9 = por %p5536_p7, %p5535_p3 }
  0x7a   : > { %p5538_p4 = pnand %p5537_p9, %p5531_p6 }
  0x7c   : > { %5541 = shalt.err (!%p5538_p4)
}
  0x7d   : > { %s5542_s30 = scalar_lea.vmem %s264_s17, 128  ;;  %p6318_p13 = pmov %p6317_p12 }
  0x7e   : > { %p5543_p11 = scmp.ne.s32.totalorder %s264_s17, %s5542_s30  ;;  %s5656_s18 = smov [#allocation9]  }
  0x7f   : > { %s5547_s25 = sshll.u32 %s5656_s18, 4  ;;  %s5548_s25 = int_to_ptr.vmem [resolvable:$false] %s5547_s25 }
  0x80   : > { %p5545_p10 = pnand %p5543_p11, %p6318_p13  ;;  %s5549_s1 = scalar_lea.vmem %s5548_s25, 256 }
  0x81   : > { %p5550_p12 = scmp.lt.s32.totalorder %s264_s17, %s5548_s25  ;;  %p5551_p0 = scmp.lt.s32.totalorder %s5549_s1, %s5542_s30 }
  0x82   : > { %p5546_p2 = pneg %p5545_p10 }
  0x83   : > { %p5552_p1 = por %p5551_p0, %p5550_p12 }
  0x85   : > { %p5553_p5 = pnand %p5552_p1, %p5546_p2 }
  0x87   : > { %5556 = shalt.err (!%p5553_p5)
}
  0x88   : > { %5172 = dma.hbm_to_vmem [thread:$0]  (!%p6316_p8), %s5883_s5, 128, %s264_s17, %s5829_s12  }
  0x89   : > { %p6319_p6 = scmp.ne.s32.totalorder %s6307_s6, 0 }
  0x8a   : > { %p6320_p3 = scmp.eq.s32.totalorder (!%p6319_p6), %s5722_s24, 0 }
  0x8b   : > { %272 = sbr.rel (%p6319_p6) target bundleno = 1662 (0x67e), region = 40 }
  0x92   : > { %5610 = dma.done.wait (%p6320_p3), [#allocation4], 49152   ;;  %p6321_p7 = pmov %p6320_p3 }
  0x93   : > { %p6322_p9 = pmov %p6320_p3 }
  0x94   : > { %5612 = vsyncadd (%p6321_p7), [#allocation4], 4294918144 }
  0x95   : > { %5614 = dma.done.wait (%p6322_p9), [#allocation7], 32   ;;  %p6323_p4 = pmov %p6320_p3 }
  0x96   : > { %s282_s10 = sand.u32 1, %s5722_s24   ;;  %s5917_s12 = sand.u32 1, %s5631_s19  }
  0x97   : > { %5616 = vsyncadd (%p6323_p4), [#allocation7], 4294967264  ;;  %s4573_s6 = sshll.u32 %s5917_s12, 10  ;;  %s283_s13 = scalar_lea.sflag [#allocation4], %s282_s10 }
  0x98   : > { %s5920_s3 = scalar_lea.vmem [#allocation8], %s4573_s6  ;;  %p6324_p8 = scmp.ne.s32.totalorder %s6302_s28, 0 }
  0x9a   : > { %5618 = dma.done.wait (%p6324_p8), %s283_s13, 16512  }
  0x9b   : > { %5620 = vsyncadd (%p6324_p8), %s283_s13, 4294950784  ;;  %s4574_s14 = sshll.u32 %s5917_s12, 3  ;;  %s4575_s5 = sshll.u32 %s5917_s12, 4 }
  0x9c   : > { %s5928_s26 = scalar_lea.vmem [#allocation9], %s4574_s14  ;;  %s5930_s17 = scalar_lea.vmem [#allocation10], %s4575_s5 }
  0x9d   : > { %p4576_p11 = scmp.ne.s32.totalorder %s5639_s21, 0 }
  0x9e   : > { %v345_v0 = vld [vmem:[#allocation3] sm:$0xff] (!%p4576_p11)  ;;  %v351_v2 = vld [vmem:[#allocation3 + $0x30] sm:$0xff] (!%p4576_p11)  ;;  %v731_v22 = vlaneseq (!%p4576_p11)  ;;  %v5657_v23 = vmov (!%p4576_p11), 1966171168  }
  0x9f   : > { %341 = sbr.rel (%p4576_p11) target bundleno = 1169 (0x491), region = 60  ;;  %v357_v1 = vld [vmem:[#allocation3 + $0x60] sm:$0xff] (!%p4576_p11)  ;;  %v363_v4 = vld [vmem:[#allocation3 + $0x90] sm:$0xff] (!%p4576_p11)  ;;  %v746_v24 = vunpack.c.l.s4 (!%p4576_p11), %v5657_v23 }
  0xa0   : > { %v4578_v3 = vcombine.high (!%p4576_p11), %v345_v0, %v357_v1  ;;  %v4577_v5 = vcombine.low (!%p4576_p11), %v345_v0, %v357_v1  ;;  %v369_v6 = vld [vmem:[#allocation3 + $0xc0] sm:$0xff] (!%p4576_p11)  ;;  %v4590_v8 = vcombine.high (!%p4576_p11), %v351_v2, %v363_v4  ;;  %v4589_v9 = vcombine.low (!%p4576_p11), %v351_v2, %v363_v4  ;;  %v375_v11 = vld [vmem:[#allocation3 + $0xf0] sm:$0xff] (!%p4576_p11) }
  0xa1   : > { %v381_v7 = vld [vmem:[#allocation3 + $0x120] sm:$0xff] (!%p4576_p11)  ;;  %v387_v12 = vld [vmem:[#allocation3 + $0x150] sm:$0xff] (!%p4576_p11)  ;;  %v5933_v27 = vshrl.u32 (!%p4576_p11), %v731_v22, 7  ;;  %v747_v28 = vunpack.c.0.s8 (!%p4576_p11), %v746_v24 }
  0xa2   : > { %v4602_v10 = vcombine.high (!%p4576_p11), %v369_v6, %v381_v7  ;;  %2835 = vmatprep.subr.bf16.mxu1 (!%p4576_p11), %v4578_v3  ;;  %v4614_v13 = vcombine.high (!%p4576_p11), %v375_v11, %v387_v12  ;;  %3081 = vmatprep.subr.bf16.mxu0 (!%p4576_p11), %v4590_v8  ;;  %v393_v14 = vld [vmem:[#allocation3 + $0x180] sm:$0xff] (!%p4576_p11)  ;;  %v399_v16 = vld [vmem:[#allocation3 + $0x1b0] sm:$0xff] (!%p4576_p11)  ;;  %v4601_v18 = vcombine.low (!%p4576_p11), %v369_v6, %v381_v7 }
  0xa3   : > { %2836 = vmatpush1.bf16.xpose.msra.mxu1 (!%p4576_p11), %v4577_v5  ;;  %3082 = vmatpush1.bf16.xpose.msra.mxu0 (!%p4576_p11), %v4589_v9  ;;  %v405_v15 = vld [vmem:[#allocation3 + $0x1e0] sm:$0xff] (!%p4576_p11)  ;;  %v411_v17 = vld [vmem:[#allocation3 + $0x210] sm:$0xff] (!%p4576_p11)  ;;  %v4613_v19 = vcombine.low (!%p4576_p11), %v375_v11, %v387_v12  ;;  %v5936_v35 = vsub.s32 (!%p4576_p11), %v747_v28, %v5933_v27 }
  0xa4   : > { %2837 = vmatprep.subr.bf16.mxu1 (!%p4576_p11), %v4602_v10  ;;  %3083 = vmatprep.subr.bf16.mxu0 (!%p4576_p11), %v4614_v13  ;;  %v4626_v20 = vcombine.high (!%p4576_p11), %v393_v14, %v405_v15  ;;  %v4638_v21 = vcombine.high (!%p4576_p11), %v399_v16, %v411_v17  ;;  %v417_v25 = vld [vmem:[#allocation3 + $0x240] sm:$0xff] (!%p4576_p11)  ;;  %v423_v29 = vld [vmem:[#allocation3 + $0x270] sm:$0xff] (!%p4576_p11)  ;;  %v4625_v31 = vcombine.low (!%p4576_p11), %v393_v14, %v405_v15 }
  0xa5   : > { %v429_v26 = vld [vmem:[#allocation3 + $0x2a0] sm:$0xff] (!%p4576_p11)  ;;  %v435_v30 = vld [vmem:[#allocation3 + $0x2d0] sm:$0xff] (!%p4576_p11)  ;;  %v4637_v32 = vcombine.low (!%p4576_p11), %v399_v16, %v411_v17 }
  0xa6   : > { %v4650_v33 = vcombine.high %v417_v25, %v429_v26  ;;  %v4662_v34 = vcombine.high %v423_v29, %v435_v30  ;;  %v5941_v36 = vld [vmem:[%s6278_s0] sm:$0xff]  ;;  %v343_v40 = vld [vmem:[%s6278_s0 + $0x8] sm:$0xff]  ;;  %v447_v41 = vld [vmem:[#allocation3 + $0x330] sm:$0xff]  ;;  %v4649_v44 = vcombine.low %v417_v25, %v429_v26  ;;  %v4661_v46 = vcombine.low %v423_v29, %v435_v30 }
  0xa7   : > { %v441_v37 = vld [vmem:[#allocation3 + $0x300] sm:$0xff]  ;;  %v5945_v39 = vrot.slane %v5941_v36, %v5936_v35  ;;  %v459_v42 = vld [vmem:[#allocation3 + $0x390] sm:$0xff]  ;;  %v793_v43 = vcombine.high %v343_v40, %v343_v40 }
  0xa8   : > { %v453_v38 = vld [vmem:[#allocation3 + $0x360] sm:$0xff]  ;;  %v4686_v49 = vcombine.high %v447_v41, %v459_v42  ;;  %v471_v55 = vld [vmem:[#allocation3 + $0x3f0] sm:$0xff]  ;;  %v4685_v58 = vcombine.low %v447_v41, %v459_v42 }
  0xa9   : > { %v759_v45 = vcombine.high %v5945_v39, %v5945_v39  ;;  %v4674_v47 = vcombine.high %v441_v37, %v453_v38  ;;  %v5953_v48 = vrot.slane %v793_v43, %v5936_v35  ;;  %v465_v53 = vld [vmem:[#allocation3 + $0x3c0] sm:$0xff]  ;;  %v483_v56 = vld [vmem:[#allocation3 + $0x450] sm:$0xff]  ;;  %v4673_v57 = vcombine.low %v441_v37, %v453_v38 }
  0xaa   : > { %v477_v54 = vld [vmem:[#allocation3 + $0x420] sm:$0xff]  ;;  %v4710_v60 = vcombine.high %v471_v55, %v483_v56  ;;  %v495_v63 = vld [vmem:[#allocation3 + $0x4b0] sm:$0xff]  ;;  %v4709_v2 = vcombine.low %v471_v55, %v483_v56 }
  0xab   : > { %2838 = vmatpush1.bf16.xpose.msra.mxu1 %v4601_v18  ;;  %3084 = vmatpush1.bf16.xpose.msra.mxu0 %v4613_v19  ;;  %v5956_v50 = vrot.slane %v759_v45, %v5936_v35  ;;  %v809_v51 = vcombine.high %v5953_v48, %v5953_v48  ;;  %v4698_v59 = vcombine.high %v465_v53, %v477_v54  ;;  %v489_v61 = vld [vmem:[#allocation3 + $0x480] sm:$0xff]  ;;  %v507_v0 = vld [vmem:[#allocation3 + $0x510] sm:$0xff] }
  0xac   : > { %2839 = vmatprep.subr.bf16.mxu1 %v4626_v20  ;;  %3085 = vmatprep.subr.bf16.mxu0 %v4638_v21  ;;  %v501_v62 = vld [vmem:[#allocation3 + $0x4e0] sm:$0xff]  ;;  %v4697_v1 = vcombine.low %v465_v53, %v477_v54  ;;  %v4734_v4 = vcombine.high %v495_v63, %v507_v0  ;;  %v519_v7 = vld [vmem:[#allocation3 + $0x570] sm:$0xff]  ;;  %v4733_v10 = vcombine.low %v495_v63, %v507_v0 }
  0xad   : > { %2867 = vmatprep.mubr.bf16.mxu1 %v5956_v50  ;;  %v5962_v52 = vrot.slane %v809_v51, %v5936_v35  ;;  %v4722_v3 = vcombine.high %v489_v61, %v501_v62  ;;  %v513_v5 = vld [vmem:[#allocation3 + $0x540] sm:$0xff]  ;;  %v531_v8 = vld [vmem:[#allocation3 + $0x5d0] sm:$0xff]  ;;  %v4721_v9 = vcombine.low %v489_v61, %v501_v62 }
  0xae   : > { %v525_v6 = vld [vmem:[#allocation3 + $0x5a0] sm:$0xff]  ;;  %v4758_v12 = vcombine.high %v519_v7, %v531_v8  ;;  %v543_v15 = vld [vmem:[#allocation3 + $0x630] sm:$0xff]  ;;  %v4757_v18 = vcombine.low %v519_v7, %v531_v8 }
  0xaf   : > { %3113 = vmatprep.mubr.bf16.mxu0 %v5962_v52  ;;  %v4746_v11 = vcombine.high %v513_v5, %v525_v6  ;;  %v537_v13 = vld [vmem:[#allocation3 + $0x600] sm:$0xff]  ;;  %v555_v16 = vld [vmem:[#allocation3 + $0x690] sm:$0xff]  ;;  %v4745_v17 = vcombine.low %v513_v5, %v525_v6 }
  0xb0   : > { %v549_v14 = vld [vmem:[#allocation3 + $0x660] sm:$0xff]  ;;  %v4782_v20 = vcombine.high %v543_v15, %v555_v16  ;;  %v567_v23 = vld [vmem:[#allocation3 + $0x6f0] sm:$0xff]  ;;  %v4781_v26 = vcombine.low %v543_v15, %v555_v16 }
  0xb1   : > { %v4770_v19 = vcombine.high %v537_v13, %v549_v14  ;;  %v561_v21 = vld [vmem:[#allocation3 + $0x6c0] sm:$0xff]  ;;  %v579_v24 = vld [vmem:[#allocation3 + $0x750] sm:$0xff]  ;;  %v4769_v25 = vcombine.low %v537_v13, %v549_v14 }
  0xb2   : > { %v573_v22 = vld [vmem:[#allocation3 + $0x720] sm:$0xff]  ;;  %v4806_v29 = vcombine.high %v567_v23, %v579_v24  ;;  %v4805_v37 = vcombine.low %v567_v23, %v579_v24  ;;  %v615_v43 = vld [vmem:[#allocation3 + $0x870] sm:$0xff]  ;;  %v364_v23 = vld [vmem:[#allocation3 + $0x98] sm:$0xff] }
  0xb3   : > { %2840 = vmatpush1.bf16.xpose.msra.mxu1 %v4625_v31  ;;  %3086 = vmatpush1.bf16.xpose.msra.mxu0 %v4637_v32  ;;  %v4794_v28 = vcombine.high %v561_v21, %v573_v22  ;;  %v585_v30 = vld [vmem:[#allocation3 + $0x780] sm:$0xff]  ;;  %v591_v32 = vld [vmem:[#allocation3 + $0x7b0] sm:$0xff] }
  0xb4   : > { %2841 = vmatprep.subr.bf16.mxu1 %v4650_v33  ;;  %3087 = vmatprep.subr.bf16.mxu0 %v4662_v34  ;;  %v597_v31 = vld [vmem:[#allocation3 + $0x7e0] sm:$0xff]  ;;  %v603_v33 = vld [vmem:[#allocation3 + $0x810] sm:$0xff]  ;;  %v4793_v34 = vcombine.low %v561_v21, %v573_v22  ;;  %v358_v21 = vld [vmem:[#allocation3 + $0x68] sm:$0xff] }
  0xb5   : > { %v4818_v38 = vcombine.high %v585_v30, %v597_v31  ;;  %v4830_v40 = vcombine.high %v591_v32, %v603_v33  ;;  %v609_v41 = vld [vmem:[#allocation3 + $0x840] sm:$0xff]  ;;  %v4817_v45 = vcombine.low %v585_v30, %v597_v31  ;;  %v639_v54 = vld [vmem:[#allocation3 + $0x930] sm:$0xff]  ;;  %v352_v22 = vld [vmem:[#allocation3 + $0x38] sm:$0xff]  ;;  %v5967_v31 = vrot.slane %v5945_v39, %v5936_v35 }
  0xb6   : > { %v621_v42 = vld [vmem:[#allocation3 + $0x8a0] sm:$0xff]  ;;  %v651_v55 = vld [vmem:[#allocation3 + $0x990] sm:$0xff]  ;;  %v382_v30 = vld [vmem:[#allocation3 + $0x128] sm:$0xff] }
  0xb7   : > { %v633_v51 = vld [vmem:[#allocation3 + $0x900] sm:$0xff]  ;;  %v4841_v56 = vcombine.low %v609_v41, %v621_v42  ;;  %v663_v62 = vld [vmem:[#allocation3 + $0x9f0] sm:$0xff]  ;;  %v394_v39 = vld [vmem:[#allocation3 + $0x188] sm:$0xff] }
  0xb8   : > { %v645_v53 = vld [vmem:[#allocation3 + $0x960] sm:$0xff]  ;;  %v675_v63 = vld [vmem:[#allocation3 + $0xa50] sm:$0xff] }
  0xb9   : > { %v669_v61 = vld [vmem:[#allocation3 + $0xa20] sm:$0xff]  ;;  %v4865_v0 = vcombine.low %v633_v51, %v645_v53  ;;  %v687_v6 = vld [vmem:[#allocation3 + $0xab0] sm:$0xff] }
  0xba   : > { %v693_v5 = vld [vmem:[#allocation3 + $0xae0] sm:$0xff]  ;;  %v699_v7 = vld [vmem:[#allocation3 + $0xb10] sm:$0xff] }
  0xbb   : > { %2842 = vmatpush1.bf16.xpose.msra.mxu1 %v4649_v44  ;;  %3088 = vmatpush1.bf16.xpose.msra.mxu0 %v4661_v46  ;;  %v627_v44 = vld [vmem:[#allocation3 + $0x8d0] sm:$0xff]  ;;  %v4829_v46 = vcombine.low %v591_v32, %v603_v33  ;;  %v717_v13 = vld [vmem:[#allocation3 + $0xba0] sm:$0xff]  ;;  %v376_v32 = vld [vmem:[#allocation3 + $0xf8] sm:$0xff] }
  0xbc   : > { %2843 = vmatprep.subr.bf16.mxu1 %v4674_v47  ;;  %3089 = vmatprep.subr.bf16.mxu0 %v4686_v49  ;;  %v4842_v47 = vcombine.high %v609_v41, %v621_v42  ;;  %v4854_v49 = vcombine.high %v615_v43, %v627_v44  ;;  %v711_v14 = vld [vmem:[#allocation3 + $0xb70] sm:$0xff]  ;;  %v388_v33 = vld [vmem:[#allocation3 + $0x158] sm:$0xff]  ;;  %v791_v41 = vcombine.high %v5956_v50, %v5956_v50 }
  0xbd   : > { %v723_v15 = vld [vmem:[#allocation3 + $0xbd0] sm:$0xff]  ;;  %v4616_v42 = vcombine.high %v376_v32, %v388_v33  ;;  %v4615_v50 = vcombine.low %v376_v32, %v388_v33  ;;  %v556_v32 = vld [vmem:[#allocation3 + $0x698] sm:$0xff] }
  0xc3   : > { %2844 = vmatpush1.bf16.xpose.msra.mxu1 %v4673_v57  ;;  %3090 = vmatpush1.bf16.xpose.msra.mxu0 %v4685_v58  ;;  %v4853_v57 = vcombine.low %v615_v43, %v627_v44  ;;  %v4866_v58 = vcombine.high %v633_v51, %v645_v53  ;;  %v841_v43 = vcombine.high %v5962_v52, %v5962_v52  ;;  %v400_v44 = vld [vmem:[#allocation3 + $0x1b8] sm:$0xff]  ;;  %v418_v52 = vld [vmem:[#allocation3 + $0x248] sm:$0xff] }
  0xc4   : > { %2845 = vmatprep.subr.bf16.mxu1 %v4698_v59  ;;  %3091 = vmatprep.subr.bf16.mxu0 %v4710_v60  ;;  %v4878_v59 = vcombine.high %v639_v54, %v651_v55  ;;  %v657_v60 = vld [vmem:[#allocation3 + $0x9c0] sm:$0xff]  ;;  %v430_v51 = vld [vmem:[#allocation3 + $0x2a8] sm:$0xff]  ;;  %v424_v53 = vld [vmem:[#allocation3 + $0x278] sm:$0xff] }
  0xc5   : > { %v4889_v8 = vcombine.low %v657_v60, %v669_v61 }
  0xcb   : > { %2846 = vmatpush1.bf16.xpose.msra.mxu1 %v4697_v1  ;;  %3092 = vmatpush1.bf16.xpose.msra.mxu0 %v4709_v2  ;;  %v4877_v1 = vcombine.low %v639_v54, %v651_v55  ;;  %v4890_v2 = vcombine.high %v657_v60, %v669_v61  ;;  %v436_v54 = vld [vmem:[#allocation3 + $0x2d8] sm:$0xff]  ;;  %v454_v60 = vld [vmem:[#allocation3 + $0x368] sm:$0xff] }
  0xcc   : > { %2847 = vmatprep.subr.bf16.mxu1 %v4722_v3  ;;  %3093 = vmatprep.subr.bf16.mxu0 %v4734_v4  ;;  %v4902_v3 = vcombine.high %v663_v62, %v675_v63  ;;  %v681_v4 = vld [vmem:[#allocation3 + $0xa80] sm:$0xff]  ;;  %v448_v61 = vld [vmem:[#allocation3 + $0x338] sm:$0xff] }
  0xcd   : > { %v4913_v16 = vcombine.low %v681_v4, %v693_v5 }
  0xd3   : > { %2848 = vmatpush1.bf16.xpose.msra.mxu1 %v4721_v9  ;;  %3094 = vmatpush1.bf16.xpose.msra.mxu0 %v4733_v10  ;;  %v4901_v9 = vcombine.low %v663_v62, %v675_v63  ;;  %v4914_v10 = vcombine.high %v681_v4, %v693_v5  ;;  %v460_v62 = vld [vmem:[#allocation3 + $0x398] sm:$0xff]  ;;  %v4651_v63 = vcombine.low %v418_v52, %v430_v51  ;;  %v478_v4 = vld [vmem:[#allocation3 + $0x428] sm:$0xff] }
  0xd4   : > { %2849 = vmatprep.subr.bf16.mxu1 %v4746_v11  ;;  %3095 = vmatprep.subr.bf16.mxu0 %v4758_v12  ;;  %v4926_v11 = vcombine.high %v687_v6, %v699_v7  ;;  %v705_v12 = vld [vmem:[#allocation3 + $0xb40] sm:$0xff]  ;;  %v472_v5 = vld [vmem:[#allocation3 + $0x3f8] sm:$0xff] }
  0xd5   : > { %v4937_v24 = vcombine.low %v705_v12, %v717_v13 }
  0xdb   : > { %2850 = vmatpush1.bf16.xpose.msra.mxu1 %v4745_v17  ;;  %3096 = vmatpush1.bf16.xpose.msra.mxu0 %v4757_v18  ;;  %v4925_v17 = vcombine.low %v687_v6, %v699_v7  ;;  %v4938_v18 = vcombine.high %v705_v12, %v717_v13  ;;  %v484_v6 = vld [vmem:[#allocation3 + $0x458] sm:$0xff]  ;;  %v502_v12 = vld [vmem:[#allocation3 + $0x4e8] sm:$0xff] }
  0xdc   : > { %2851 = vmatprep.subr.bf16.mxu1 %v4770_v19  ;;  %3097 = vmatprep.subr.bf16.mxu0 %v4782_v20  ;;  %v4950_v19 = vcombine.high %v711_v14, %v723_v15  ;;  %v346_v20 = vld [vmem:[#allocation3 + $0x8] sm:$0xff]  ;;  %v496_v13 = vld [vmem:[#allocation3 + $0x4b8] sm:$0xff] }
  0xe3   : > { %2852 = vmatpush1.bf16.xpose.msra.mxu1 %v4769_v25  ;;  %3098 = vmatpush1.bf16.xpose.msra.mxu0 %v4781_v26  ;;  %v4949_v25 = vcombine.low %v711_v14, %v723_v15  ;;  %v4580_v26 = vcombine.high %v346_v20, %v358_v21  ;;  %v508_v14 = vld [vmem:[#allocation3 + $0x518] sm:$0xff] }
  0xe4   : > { %2853 = vmatprep.subr.bf16.mxu1 %v4794_v28  ;;  %3099 = vmatprep.subr.bf16.mxu0 %v4806_v29  ;;  %v4592_v28 = vcombine.high %v352_v22, %v364_v23  ;;  %v370_v29 = vld [vmem:[#allocation3 + $0xc8] sm:$0xff] }
  0xeb   : > { %2854 = vmatpush1.bf16.xpose.msra.mxu1 %v4793_v34  ;;  %3100 = vmatpush1.bf16.xpose.msra.mxu0 %v4805_v37  ;;  %v4579_v34 = vcombine.low %v346_v20, %v358_v21  ;;  %v5971_v37 = vrot.slane %v5953_v48, %v5936_v35  ;;  %v406_v48 = vld [vmem:[#allocation3 + $0x1e8] sm:$0xff]  ;;  %v520_v21 = vld [vmem:[#allocation3 + $0x578] sm:$0xff] }
  0xec   : > { %2855 = vmatprep.subr.bf16.mxu1 %v4818_v38  ;;  %3101 = vmatprep.subr.bf16.mxu0 %v4830_v40  ;;  %v4591_v38 = vcombine.low %v352_v22, %v364_v23  ;;  %v4604_v40 = vcombine.high %v370_v29, %v382_v30  ;;  %v4627_v55 = vcombine.low %v394_v39, %v406_v48  ;;  %v526_v20 = vld [vmem:[#allocation3 + $0x5a8] sm:$0xff]  ;;  %v532_v22 = vld [vmem:[#allocation3 + $0x5d8] sm:$0xff] }
  0xf3   : > { %2856 = vmatpush1.bf16.xpose.msra.mxu1 %v4817_v45  ;;  %3102 = vmatpush1.bf16.xpose.msra.mxu0 %v4829_v46  ;;  %v412_v45 = vld [vmem:[#allocation3 + $0x218] sm:$0xff]  ;;  %v4603_v46 = vcombine.low %v370_v29, %v382_v30  ;;  %v550_v29 = vld [vmem:[#allocation3 + $0x668] sm:$0xff] }
  0xf4   : > { %2857 = vmatprep.subr.bf16.mxu1 %v4842_v47  ;;  %3103 = vmatprep.subr.bf16.mxu0 %v4854_v49  ;;  %v4628_v47 = vcombine.high %v394_v39, %v406_v48  ;;  %v4640_v49 = vcombine.high %v400_v44, %v412_v45  ;;  %v544_v30 = vld [vmem:[#allocation3 + $0x638] sm:$0xff] }
  0xf5   : > { %v580_v39 = vld [vmem:[#allocation3 + $0x758] sm:$0xff] }
  0xfb   : > { %2858 = vmatpush1.bf16.xpose.msra.mxu1 %v4841_v56  ;;  %3104 = vmatpush1.bf16.xpose.msra.mxu0 %v4853_v57  ;;  %v4639_v56 = vcombine.low %v400_v44, %v412_v45  ;;  %v4652_v57 = vcombine.high %v418_v52, %v430_v51  ;;  %v4783_v44 = vcombine.low %v544_v30, %v556_v32  ;;  %v604_v52 = vld [vmem:[#allocation3 + $0x818] sm:$0xff] }
  0xfc   : > { %2859 = vmatprep.subr.bf16.mxu1 %v4866_v58  ;;  %3105 = vmatprep.subr.bf16.mxu0 %v4878_v59  ;;  %v4664_v58 = vcombine.high %v424_v53, %v436_v54  ;;  %v442_v59 = vld [vmem:[#allocation3 + $0x308] sm:$0xff] }
  0xfd   : > { %v4675_v7 = vcombine.low %v442_v59, %v454_v60 }
 0x103   : > { %2860 = vmatpush1.bf16.xpose.msra.mxu1 %v4865_v0  ;;  %3106 = vmatpush1.bf16.xpose.msra.mxu0 %v4877_v1  ;;  %v4663_v0 = vcombine.low %v424_v53, %v436_v54  ;;  %v4676_v1 = vcombine.high %v442_v59, %v454_v60  ;;  %v628_v59 = vld [vmem:[#allocation3 + $0x8d8] sm:$0xff] }
 0x104   : > { %2861 = vmatprep.subr.bf16.mxu1 %v4890_v2  ;;  %3107 = vmatprep.subr.bf16.mxu0 %v4902_v3  ;;  %v4688_v2 = vcombine.high %v448_v61, %v460_v62  ;;  %v466_v3 = vld [vmem:[#allocation3 + $0x3c8] sm:$0xff] }
 0x105   : > { %v4699_v15 = vcombine.low %v466_v3, %v478_v4 }
 0x10b   : > { %2862 = vmatpush1.bf16.xpose.msra.mxu1 %v4889_v8  ;;  %3108 = vmatpush1.bf16.xpose.msra.mxu0 %v4901_v9  ;;  %v4687_v8 = vcombine.low %v448_v61, %v460_v62  ;;  %v4700_v9 = vcombine.high %v466_v3, %v478_v4  ;;  %v652_v3 = vld [vmem:[#allocation3 + $0x998] sm:$0xff] }
 0x10c   : > { %2863 = vmatprep.subr.bf16.mxu1 %v4914_v10  ;;  %3109 = vmatprep.subr.bf16.mxu0 %v4926_v11  ;;  %v4712_v10 = vcombine.high %v472_v5, %v484_v6  ;;  %v490_v11 = vld [vmem:[#allocation3 + $0x488] sm:$0xff] }
 0x10d   : > { %v4723_v23 = vcombine.low %v490_v11, %v502_v12 }
 0x113   : > { %2864 = vmatpush1.bf16.xpose.msra.mxu1 %v4913_v16  ;;  %3110 = vmatpush1.bf16.xpose.msra.mxu0 %v4925_v17  ;;  %v4711_v16 = vcombine.low %v472_v5, %v484_v6  ;;  %v4724_v17 = vcombine.high %v490_v11, %v502_v12  ;;  %v676_v11 = vld [vmem:[#allocation3 + $0xa58] sm:$0xff] }
 0x114   : > { %2865 = vmatprep.subr.bf16.mxu1 %v4938_v18  ;;  %3111 = vmatprep.subr.bf16.mxu0 %v4950_v19  ;;  %v4736_v18 = vcombine.high %v496_v13, %v508_v14  ;;  %v514_v19 = vld [vmem:[#allocation3 + $0x548] sm:$0xff] }
 0x115   : > { %v4747_v33 = vcombine.low %v514_v19, %v526_v20 }
 0x11b   : > { %2866 = vmatpush1.bf16.xpose.msra.mxu1 %v4937_v24  ;;  %3112 = vmatpush1.bf16.xpose.msra.mxu0 %v4949_v25  ;;  %v4735_v24 = vcombine.low %v496_v13, %v508_v14  ;;  %v4748_v25 = vcombine.high %v514_v19, %v526_v20  ;;  %v700_v19 = vld [vmem:[#allocation3 + $0xb18] sm:$0xff] }
 0x11c   : > { %2876 = vmatprep.subr.bf16.mxu1 %v4580_v26  ;;  %3122 = vmatprep.subr.bf16.mxu0 %v4592_v28  ;;  %v4760_v26 = vcombine.high %v520_v21, %v532_v22  ;;  %v538_v28 = vld [vmem:[#allocation3 + $0x608] sm:$0xff] }
 0x11d   : > { %v4771_v48 = vcombine.low %v538_v28, %v550_v29 }
 0x122   : > { %2868 = vmatmul.mubr.bf16.vlgmr.msra.gmra.mrb[0].mxu1 %v5967_v31  ;;  %3114 = vmatmul.mubr.bf16.vlgmr.msra.gmra.mrb[0].mxu0 %v5971_v37 }
 0x123   : > { %2877 = vmatpush1.bf16.xpose.msra.mxu1 %v4579_v34  ;;  %3123 = vmatpush1.bf16.xpose.msra.mxu0 %v4591_v38  ;;  %v4759_v34 = vcombine.low %v520_v21, %v532_v22  ;;  %v4772_v38 = vcombine.high %v538_v28, %v550_v29  ;;  %v724_v28 = vld [vmem:[#allocation3 + $0xbd8] sm:$0xff] }
 0x124   : > { %2878 = vmatprep.subr.bf16.mxu1 %v4604_v40  ;;  %3124 = vmatprep.subr.bf16.mxu0 %v4616_v42  ;;  %v4784_v40 = vcombine.high %v544_v30, %v556_v32  ;;  %v574_v42 = vld [vmem:[#allocation3 + $0x728] sm:$0xff] }
 0x125   : > { %2908 = vmatprep.mubr.bf16.mxu1 %v791_v41  ;;  %3154 = vmatprep.mubr.bf16.mxu0 %v841_v43  ;;  %v562_v41 = vld [vmem:[#allocation3 + $0x6c8] sm:$0xff]  ;;  %v568_v43 = vld [vmem:[#allocation3 + $0x6f8] sm:$0xff] }
 0x126   : > { %v4796_v45 = vcombine.high %v562_v41, %v574_v42  ;;  %v4795_v51 = vcombine.low %v562_v41, %v574_v42  ;;  %v4807_v53 = vcombine.low %v568_v43, %v580_v39  ;;  %v365_v41 = vld [vmem:[#allocation3 + $0xa0] sm:$0xff] }
 0x12b   : > { %2879 = vmatpush1.bf16.xpose.msra.mxu1 %v4603_v46  ;;  %3125 = vmatpush1.bf16.xpose.msra.mxu0 %v4615_v50  ;;  %v4808_v46 = vcombine.high %v568_v43, %v580_v39  ;;  %v586_v50 = vld [vmem:[#allocation3 + $0x788] sm:$0xff]  ;;  %v744_v43 = vcombine.high %v5941_v36, %v5941_v36 }
 0x12c   : > { %2880 = vmatprep.subr.bf16.mxu1 %v4628_v47  ;;  %3126 = vmatprep.subr.bf16.mxu0 %v4640_v49  ;;  %v598_v47 = vld [vmem:[#allocation3 + $0x7e8] sm:$0xff]  ;;  %v592_v49 = vld [vmem:[#allocation3 + $0x7b8] sm:$0xff] }
 0x12d   : > { %v4820_v54 = vcombine.high %v586_v50, %v598_v47  ;;  %v4819_v60 = vcombine.low %v586_v50, %v598_v47  ;;  %v4831_v61 = vcombine.low %v592_v49, %v604_v52  ;;  %v371_v50 = vld [vmem:[#allocation3 + $0xd0] sm:$0xff] }
 0x12e   : > { %v383_v47 = vld [vmem:[#allocation3 + $0x130] sm:$0xff] }
 0x133   : > { %2881 = vmatpush1.bf16.xpose.msra.mxu1 %v4627_v55  ;;  %3127 = vmatpush1.bf16.xpose.msra.mxu0 %v4639_v56  ;;  %v4832_v55 = vcombine.high %v592_v49, %v604_v52  ;;  %v610_v56 = vld [vmem:[#allocation3 + $0x848] sm:$0xff]  ;;  %v789_v49 = vcombine.high %v5967_v31, %v5967_v31  ;;  %v377_v52 = vld [vmem:[#allocation3 + $0x100] sm:$0xff] }
 0x134   : > { %2882 = vmatprep.subr.bf16.mxu1 %v4652_v57  ;;  %3128 = vmatprep.subr.bf16.mxu0 %v4664_v58  ;;  %v622_v57 = vld [vmem:[#allocation3 + $0x8a8] sm:$0xff]  ;;  %v616_v58 = vld [vmem:[#allocation3 + $0x878] sm:$0xff] }
 0x135   : > { %v4844_v62 = vcombine.high %v610_v56, %v622_v57  ;;  %v4843_v4 = vcombine.low %v610_v56, %v622_v57  ;;  %v4855_v5 = vcombine.low %v616_v58, %v628_v59 }
 0x13b   : > { %2883 = vmatpush1.bf16.xpose.msra.mxu1 %v4651_v63  ;;  %3129 = vmatpush1.bf16.xpose.msra.mxu0 %v4663_v0  ;;  %v4856_v63 = vcombine.high %v616_v58, %v628_v59  ;;  %v634_v0 = vld [vmem:[#allocation3 + $0x908] sm:$0xff]  ;;  %v4606_v58 = vcombine.high %v371_v50, %v383_v47 }
 0x13c   : > { %2884 = vmatprep.subr.bf16.mxu1 %v4676_v1  ;;  %3130 = vmatprep.subr.bf16.mxu0 %v4688_v2  ;;  %v646_v1 = vld [vmem:[#allocation3 + $0x968] sm:$0xff]  ;;  %v640_v2 = vld [vmem:[#allocation3 + $0x938] sm:$0xff] }
 0x13d   : > { %v4868_v6 = vcombine.high %v634_v0, %v646_v1  ;;  %v4867_v12 = vcombine.low %v634_v0, %v646_v1  ;;  %v4879_v13 = vcombine.low %v640_v2, %v652_v3  ;;  %v4605_v0 = vcombine.low %v371_v50, %v383_v47 }
 0x143   : > { %2885 = vmatpush1.bf16.xpose.msra.mxu1 %v4675_v7  ;;  %3131 = vmatpush1.bf16.xpose.msra.mxu0 %v4687_v8  ;;  %v4880_v7 = vcombine.high %v640_v2, %v652_v3  ;;  %v658_v8 = vld [vmem:[#allocation3 + $0x9c8] sm:$0xff] }
 0x144   : > { %2886 = vmatprep.subr.bf16.mxu1 %v4700_v9  ;;  %3132 = vmatprep.subr.bf16.mxu0 %v4712_v10  ;;  %v670_v9 = vld [vmem:[#allocation3 + $0xa28] sm:$0xff]  ;;  %v664_v10 = vld [vmem:[#allocation3 + $0x9f8] sm:$0xff] }
 0x145   : > { %v4892_v14 = vcombine.high %v658_v8, %v670_v9  ;;  %v4891_v20 = vcombine.low %v658_v8, %v670_v9  ;;  %v4903_v21 = vcombine.low %v664_v10, %v676_v11 }
 0x14b   : > { %2887 = vmatpush1.bf16.xpose.msra.mxu1 %v4699_v15  ;;  %3133 = vmatpush1.bf16.xpose.msra.mxu0 %v4711_v16  ;;  %v4904_v15 = vcombine.high %v664_v10, %v676_v11  ;;  %v682_v16 = vld [vmem:[#allocation3 + $0xa88] sm:$0xff] }
 0x14c   : > { %2888 = vmatprep.subr.bf16.mxu1 %v4724_v17  ;;  %3134 = vmatprep.subr.bf16.mxu0 %v4736_v18  ;;  %v694_v17 = vld [vmem:[#allocation3 + $0xae8] sm:$0xff]  ;;  %v688_v18 = vld [vmem:[#allocation3 + $0xab8] sm:$0xff] }
 0x14d   : > { %v4916_v22 = vcombine.high %v682_v16, %v694_v17  ;;  %v4915_v29 = vcombine.low %v682_v16, %v694_v17  ;;  %v4927_v30 = vcombine.low %v688_v18, %v700_v19 }
 0x153   : > { %2889 = vmatpush1.bf16.xpose.msra.mxu1 %v4723_v23  ;;  %3135 = vmatpush1.bf16.xpose.msra.mxu0 %v4735_v24  ;;  %v4928_v23 = vcombine.high %v688_v18, %v700_v19  ;;  %v706_v24 = vld [vmem:[#allocation3 + $0xb48] sm:$0xff] }
 0x154   : > { %2890 = vmatprep.subr.bf16.mxu1 %v4748_v25  ;;  %3136 = vmatprep.subr.bf16.mxu0 %v4760_v26  ;;  %v718_v25 = vld [vmem:[#allocation3 + $0xba8] sm:$0xff]  ;;  %v712_v26 = vld [vmem:[#allocation3 + $0xb78] sm:$0xff] }
 0x155   : > { %v4940_v32 = vcombine.high %v706_v24, %v718_v25  ;;  %v4939_v42 = vcombine.low %v706_v24, %v718_v25  ;;  %v4951_v39 = vcombine.low %v712_v26, %v724_v28 }
 0x15b   : > { %2891 = vmatpush1.bf16.xpose.msra.mxu1 %v4747_v33  ;;  %3137 = vmatpush1.bf16.xpose.msra.mxu0 %v4759_v34  ;;  %v4952_v33 = vcombine.high %v712_v26, %v724_v28  ;;  %v347_v34 = vld [vmem:[#allocation3 + $0x10] sm:$0xff] }
 0x15c   : > { %2892 = vmatprep.subr.bf16.mxu1 %v4772_v38  ;;  %3138 = vmatprep.subr.bf16.mxu0 %v4784_v40  ;;  %v359_v38 = vld [vmem:[#allocation3 + $0x70] sm:$0xff]  ;;  %v353_v40 = vld [vmem:[#allocation3 + $0x40] sm:$0xff] }
 0x15d   : > { %v4593_v57 = vcombine.low %v353_v40, %v365_v41 }
 0x163   : > { %2893 = vmatpush1.bf16.xpose.msra.mxu1 %v4771_v48  ;;  %3139 = vmatpush1.bf16.xpose.msra.mxu0 %v4783_v44  ;;  %v4582_v48 = vcombine.high %v347_v34, %v359_v38  ;;  %v4594_v44 = vcombine.high %v353_v40, %v365_v41 }
 0x164   : > { %2894 = vmatprep.subr.bf16.mxu1 %v4796_v45  ;;  %3140 = vmatprep.subr.bf16.mxu0 %v4808_v46  ;;  %v5982_v45 = vrot.slane %v744_v43, %v5936_v35  ;;  %v5987_v46 = vld [vmem:[%s6278_s0 + $0x10] sm:$0xff] }
 0x165   : > { %v5991_v36 = vrot.slane %v5987_v46, %v5936_v35  ;;  %v527_v43 = vld [vmem:[#allocation3 + $0x5b0] sm:$0xff] }
 0x167   : > { %v857_v56 = vcombine.high %v5991_v36, %v5991_v36 }
 0x169   : > { %v6005_v31 = vrot.slane %v857_v56, %v5936_v35 }
 0x16b   : > { %2895 = vmatpush1.bf16.xpose.msra.mxu1 %v4795_v51  ;;  %3141 = vmatpush1.bf16.xpose.msra.mxu0 %v4807_v53  ;;  %v389_v51 = vld [vmem:[#allocation3 + $0x160] sm:$0xff]  ;;  %v760_v53 = vcombine.high %v5982_v45, %v5982_v45 }
 0x16c   : > { %2896 = vmatprep.subr.bf16.mxu1 %v4820_v54  ;;  %3142 = vmatprep.subr.bf16.mxu0 %v4832_v55  ;;  %v839_v54 = vcombine.high %v5971_v37, %v5971_v37  ;;  %v4581_v55 = vcombine.low %v347_v34, %v359_v38  ;;  %v4618_v59 = vcombine.high %v377_v52, %v389_v51  ;;  %v395_v37 = vld [vmem:[#allocation3 + $0x190] sm:$0xff] }
 0x16d   : > { %v4617_v1 = vcombine.low %v377_v52, %v389_v51  ;;  %v539_v52 = vld [vmem:[#allocation3 + $0x610] sm:$0xff] }
 0x16e   : > { %v551_v51 = vld [vmem:[#allocation3 + $0x670] sm:$0xff] }
 0x173   : > { %2897 = vmatpush1.bf16.xpose.msra.mxu1 %v4819_v60  ;;  %3143 = vmatpush1.bf16.xpose.msra.mxu0 %v4831_v61  ;;  %v6002_v60 = vrot.slane %v760_v53, %v5936_v35  ;;  %v407_v61 = vld [vmem:[#allocation3 + $0x1f0] sm:$0xff]  ;;  %v545_v53 = vld [vmem:[#allocation3 + $0x640] sm:$0xff] }
 0x174   : > { %2898 = vmatprep.subr.bf16.mxu1 %v4844_v62  ;;  %3144 = vmatprep.subr.bf16.mxu0 %v4856_v63  ;;  %v401_v62 = vld [vmem:[#allocation3 + $0x1c0] sm:$0xff]  ;;  %v4630_v2 = vcombine.high %v395_v37, %v407_v61  ;;  %v4629_v8 = vcombine.low %v395_v37, %v407_v61  ;;  %v575_v37 = vld [vmem:[#allocation3 + $0x730] sm:$0xff] }
 0x175   : > { %v413_v63 = vld [vmem:[#allocation3 + $0x220] sm:$0xff] }
 0x176   : > { %v4642_v3 = vcombine.high %v401_v62, %v413_v63  ;;  %v4641_v9 = vcombine.low %v401_v62, %v413_v63  ;;  %v569_v61 = vld [vmem:[#allocation3 + $0x700] sm:$0xff]  ;;  %v4773_v63 = vcombine.low %v539_v52, %v551_v51 }
 0x177   : > { %v581_v62 = vld [vmem:[#allocation3 + $0x760] sm:$0xff] }
 0x17b   : > { %2899 = vmatpush1.bf16.xpose.msra.mxu1 %v4843_v4  ;;  %3145 = vmatpush1.bf16.xpose.msra.mxu0 %v4855_v5  ;;  %v419_v4 = vld [vmem:[#allocation3 + $0x250] sm:$0xff] }
 0x17c   : > { %2900 = vmatprep.subr.bf16.mxu1 %v4868_v6  ;;  %3146 = vmatprep.subr.bf16.mxu0 %v4880_v7  ;;  %v431_v5 = vld [vmem:[#allocation3 + $0x2b0] sm:$0xff]  ;;  %v425_v6 = vld [vmem:[#allocation3 + $0x280] sm:$0xff] }
 0x17d   : > { %v437_v7 = vld [vmem:[#allocation3 + $0x2e0] sm:$0xff]  ;;  %v4654_v10 = vcombine.high %v419_v4, %v431_v5  ;;  %v4653_v16 = vcombine.low %v419_v4, %v431_v5  ;;  %v599_v4 = vld [vmem:[#allocation3 + $0x7f0] sm:$0xff] }
 0x17e   : > { %v4666_v11 = vcombine.high %v425_v6, %v437_v7  ;;  %v4665_v17 = vcombine.low %v425_v6, %v437_v7  ;;  %v593_v5 = vld [vmem:[#allocation3 + $0x7c0] sm:$0xff] }
 0x17f   : > { %v605_v6 = vld [vmem:[#allocation3 + $0x820] sm:$0xff] }
 0x183   : > { %2901 = vmatpush1.bf16.xpose.msra.mxu1 %v4867_v12  ;;  %3147 = vmatpush1.bf16.xpose.msra.mxu0 %v4879_v13  ;;  %v443_v12 = vld [vmem:[#allocation3 + $0x310] sm:$0xff] }
 0x184   : > { %2902 = vmatprep.subr.bf16.mxu1 %v4892_v14  ;;  %3148 = vmatprep.subr.bf16.mxu0 %v4904_v15  ;;  %v455_v13 = vld [vmem:[#allocation3 + $0x370] sm:$0xff]  ;;  %v449_v14 = vld [vmem:[#allocation3 + $0x340] sm:$0xff] }
 0x185   : > { %v461_v15 = vld [vmem:[#allocation3 + $0x3a0] sm:$0xff]  ;;  %v4678_v18 = vcombine.high %v443_v12, %v455_v13  ;;  %v4677_v24 = vcombine.low %v443_v12, %v455_v13  ;;  %v623_v12 = vld [vmem:[#allocation3 + $0x8b0] sm:$0xff] }
 0x186   : > { %v4690_v19 = vcombine.high %v449_v14, %v461_v15  ;;  %v4689_v25 = vcombine.low %v449_v14, %v461_v15  ;;  %v617_v13 = vld [vmem:[#allocation3 + $0x880] sm:$0xff] }
 0x187   : > { %v629_v14 = vld [vmem:[#allocation3 + $0x8e0] sm:$0xff] }
 0x18b   : > { %2903 = vmatpush1.bf16.xpose.msra.mxu1 %v4891_v20  ;;  %3149 = vmatpush1.bf16.xpose.msra.mxu0 %v4903_v21  ;;  %v467_v20 = vld [vmem:[#allocation3 + $0x3d0] sm:$0xff] }
 0x18c   : > { %2904 = vmatprep.subr.bf16.mxu1 %v4916_v22  ;;  %3150 = vmatprep.subr.bf16.mxu0 %v4928_v23  ;;  %v479_v21 = vld [vmem:[#allocation3 + $0x430] sm:$0xff]  ;;  %v473_v22 = vld [vmem:[#allocation3 + $0x400] sm:$0xff] }
 0x18d   : > { %v485_v23 = vld [vmem:[#allocation3 + $0x460] sm:$0xff]  ;;  %v4702_v26 = vcombine.high %v467_v20, %v479_v21  ;;  %v4701_v34 = vcombine.low %v467_v20, %v479_v21  ;;  %v647_v20 = vld [vmem:[#allocation3 + $0x970] sm:$0xff] }
 0x18e   : > { %v4714_v28 = vcombine.high %v473_v22, %v485_v23  ;;  %v4713_v38 = vcombine.low %v473_v22, %v485_v23  ;;  %v641_v21 = vld [vmem:[#allocation3 + $0x940] sm:$0xff] }
 0x18f   : > { %v653_v22 = vld [vmem:[#allocation3 + $0x9a0] sm:$0xff] }
 0x193   : > { %2905 = vmatpush1.bf16.xpose.msra.mxu1 %v4915_v29  ;;  %3151 = vmatpush1.bf16.xpose.msra.mxu0 %v4927_v30  ;;  %v491_v29 = vld [vmem:[#allocation3 + $0x490] sm:$0xff] }
 0x194   : > { %2906 = vmatprep.subr.bf16.mxu1 %v4940_v32  ;;  %3152 = vmatprep.subr.bf16.mxu0 %v4952_v33  ;;  %v503_v30 = vld [vmem:[#allocation3 + $0x4f0] sm:$0xff]  ;;  %v497_v32 = vld [vmem:[#allocation3 + $0x4c0] sm:$0xff] }
 0x195   : > { %v509_v33 = vld [vmem:[#allocation3 + $0x520] sm:$0xff]  ;;  %v4726_v40 = vcombine.high %v491_v29, %v503_v30 }
 0x196   : > { %v4738_v41 = vcombine.high %v497_v32, %v509_v33  ;;  %v4737_v50 = vcombine.low %v497_v32, %v509_v33  ;;  %v677_v32 = vld [vmem:[#allocation3 + $0xa60] sm:$0xff] }
 0x19b   : > { %2907 = vmatpush1.bf16.xpose.msra.mxu1 %v4939_v42  ;;  %3153 = vmatpush1.bf16.xpose.msra.mxu0 %v4951_v39  ;;  %v515_v42 = vld [vmem:[#allocation3 + $0x550] sm:$0xff]  ;;  %v521_v39 = vld [vmem:[#allocation3 + $0x580] sm:$0xff] }
 0x19c   : > { %2917 = vmatprep.subr.bf16.mxu1 %v4582_v48  ;;  %3163 = vmatprep.subr.bf16.mxu0 %v4594_v44  ;;  %v533_v48 = vld [vmem:[#allocation3 + $0x5e0] sm:$0xff]  ;;  %v4725_v44 = vcombine.low %v491_v29, %v503_v30  ;;  %v4750_v47 = vcombine.high %v515_v42, %v527_v43  ;;  %v671_v29 = vld [vmem:[#allocation3 + $0xa30] sm:$0xff] }
 0x19d   : > { %v4761_v56 = vcombine.low %v521_v39, %v533_v48  ;;  %v665_v30 = vld [vmem:[#allocation3 + $0xa00] sm:$0xff] }
 0x1a2   : > { %2909 = vmatmul.mubr.bf16.vlgmr.msra.gmra.mrb[0].mxu1 %v789_v49  ;;  %3155 = vmatmul.mubr.bf16.vlgmr.msra.gmra.mrb[0].mxu0 %v839_v54  ;;  %v4762_v49 = vcombine.high %v521_v39, %v533_v48  ;;  %v557_v54 = vld [vmem:[#allocation3 + $0x6a0] sm:$0xff] }
 0x1a3   : > { %2918 = vmatpush1.bf16.xpose.msra.mxu1 %v4581_v55  ;;  %3164 = vmatpush1.bf16.xpose.msra.mxu0 %v4593_v57  ;;  %v4749_v55 = vcombine.low %v515_v42, %v527_v43  ;;  %v4774_v57 = vcombine.high %v539_v52, %v551_v51  ;;  %v695_v42 = vld [vmem:[#allocation3 + $0xaf0] sm:$0xff]  ;;  %v689_v43 = vld [vmem:[#allocation3 + $0xac0] sm:$0xff] }
 0x1a4   : > { %2919 = vmatprep.subr.bf16.mxu1 %v4606_v58  ;;  %3165 = vmatprep.subr.bf16.mxu0 %v4618_v59  ;;  %v4786_v58 = vcombine.high %v545_v53, %v557_v54  ;;  %v563_v59 = vld [vmem:[#allocation3 + $0x6d0] sm:$0xff]  ;;  %v701_v39 = vld [vmem:[#allocation3 + $0xb20] sm:$0xff] }
 0x1a5   : > { %2949 = vmatprep.mubr.bf16.mxu1 %v6002_v60  ;;  %3195 = vmatprep.mubr.bf16.mxu0 %v6005_v31  ;;  %v4797_v7 = vcombine.low %v563_v59, %v575_v37  ;;  %v719_v52 = vld [vmem:[#allocation3 + $0xbb0] sm:$0xff]  ;;  %v713_v51 = vld [vmem:[#allocation3 + $0xb80] sm:$0xff] }
 0x1ab   : > { %2920 = vmatpush1.bf16.xpose.msra.mxu1 %v4605_v0  ;;  %3166 = vmatpush1.bf16.xpose.msra.mxu0 %v4617_v1  ;;  %v4785_v0 = vcombine.low %v545_v53, %v557_v54  ;;  %v4798_v1 = vcombine.high %v563_v59, %v575_v37  ;;  %v725_v53 = vld [vmem:[#allocation3 + $0xbe0] sm:$0xff]  ;;  %v360_v59 = vld [vmem:[#allocation3 + $0x78] sm:$0xff]  ;;  %v354_v37 = vld [vmem:[#allocation3 + $0x48] sm:$0xff] }
 0x1ac   : > { %2921 = vmatprep.subr.bf16.mxu1 %v4630_v2  ;;  %3167 = vmatprep.subr.bf16.mxu0 %v4642_v3  ;;  %v4810_v2 = vcombine.high %v569_v61, %v581_v62  ;;  %v587_v3 = vld [vmem:[#allocation3 + $0x790] sm:$0xff] }
 0x1ad   : > { %v4821_v15 = vcombine.low %v587_v3, %v599_v4 }
 0x1b3   : > { %2922 = vmatpush1.bf16.xpose.msra.mxu1 %v4629_v8  ;;  %3168 = vmatpush1.bf16.xpose.msra.mxu0 %v4641_v9  ;;  %v4809_v8 = vcombine.low %v569_v61, %v581_v62  ;;  %v4822_v9 = vcombine.high %v587_v3, %v599_v4  ;;  %v366_v61 = vld [vmem:[#allocation3 + $0xa8] sm:$0xff]  ;;  %v384_v3 = vld [vmem:[#allocation3 + $0x138] sm:$0xff]  ;;  %v6011_v4 = vrot.slane %v5982_v45, %v5936_v35 }
 0x1b4   : > { %2923 = vmatprep.subr.bf16.mxu1 %v4654_v10  ;;  %3169 = vmatprep.subr.bf16.mxu0 %v4666_v11  ;;  %v4834_v10 = vcombine.high %v593_v5, %v605_v6  ;;  %v611_v11 = vld [vmem:[#allocation3 + $0x850] sm:$0xff]  ;;  %v396_v45 = vld [vmem:[#allocation3 + $0x198] sm:$0xff] }
 0x1b5   : > { %v4845_v23 = vcombine.low %v611_v11, %v623_v12 }
 0x1bb   : > { %2924 = vmatpush1.bf16.xpose.msra.mxu1 %v4653_v16  ;;  %3170 = vmatpush1.bf16.xpose.msra.mxu0 %v4665_v17  ;;  %v4833_v16 = vcombine.low %v593_v5, %v605_v6  ;;  %v4846_v17 = vcombine.high %v611_v11, %v623_v12  ;;  %v378_v5 = vld [vmem:[#allocation3 + $0x108] sm:$0xff]  ;;  %v792_v12 = vcombine.high %v6002_v60, %v6002_v60 }
 0x1bc   : > { %2925 = vmatprep.subr.bf16.mxu1 %v4678_v18  ;;  %3171 = vmatprep.subr.bf16.mxu0 %v4690_v19  ;;  %v4858_v18 = vcombine.high %v617_v13, %v629_v14  ;;  %v635_v19 = vld [vmem:[#allocation3 + $0x910] sm:$0xff]  ;;  %v390_v6 = vld [vmem:[#allocation3 + $0x168] sm:$0xff] }
 0x1bd   : > { %v4869_v33 = vcombine.low %v635_v19, %v647_v20  ;;  %v4620_v11 = vcombine.high %v378_v5, %v390_v6 }
 0x1c3   : > { %2926 = vmatpush1.bf16.xpose.msra.mxu1 %v4677_v24  ;;  %3172 = vmatpush1.bf16.xpose.msra.mxu0 %v4689_v25  ;;  %v4857_v24 = vcombine.low %v617_v13, %v629_v14  ;;  %v4870_v25 = vcombine.high %v635_v19, %v647_v20  ;;  %v889_v13 = vcombine.high %v6005_v31, %v6005_v31  ;;  %v402_v14 = vld [vmem:[#allocation3 + $0x1c8] sm:$0xff]  ;;  %v420_v31 = vld [vmem:[#allocation3 + $0x258] sm:$0xff] }
 0x1c4   : > { %2927 = vmatprep.subr.bf16.mxu1 %v4702_v26  ;;  %3173 = vmatprep.subr.bf16.mxu0 %v4714_v28  ;;  %v4882_v26 = vcombine.high %v641_v21, %v653_v22  ;;  %v659_v28 = vld [vmem:[#allocation3 + $0x9d0] sm:$0xff]  ;;  %v432_v19 = vld [vmem:[#allocation3 + $0x2b8] sm:$0xff]  ;;  %v426_v20 = vld [vmem:[#allocation3 + $0x288] sm:$0xff] }
 0x1c5   : > { %v4893_v48 = vcombine.low %v659_v28, %v671_v29 }
 0x1cb   : > { %2928 = vmatpush1.bf16.xpose.msra.mxu1 %v4701_v34  ;;  %3174 = vmatpush1.bf16.xpose.msra.mxu0 %v4713_v38  ;;  %v4881_v34 = vcombine.low %v641_v21, %v653_v22  ;;  %v4894_v38 = vcombine.high %v659_v28, %v671_v29  ;;  %v438_v21 = vld [vmem:[#allocation3 + $0x2e8] sm:$0xff]  ;;  %v456_v28 = vld [vmem:[#allocation3 + $0x378] sm:$0xff] }
 0x1cc   : > { %2929 = vmatprep.subr.bf16.mxu1 %v4726_v40  ;;  %3175 = vmatprep.subr.bf16.mxu0 %v4738_v41  ;;  %v4906_v40 = vcombine.high %v665_v30, %v677_v32  ;;  %v683_v41 = vld [vmem:[#allocation3 + $0xa90] sm:$0xff]  ;;  %v450_v29 = vld [vmem:[#allocation3 + $0x348] sm:$0xff] }
 0x1cd   : > { %v4917_v54 = vcombine.low %v683_v41, %v695_v42 }
 0x1d3   : > { %2930 = vmatpush1.bf16.xpose.msra.mxu1 %v4725_v44  ;;  %3176 = vmatpush1.bf16.xpose.msra.mxu0 %v4737_v50  ;;  %v4905_v44 = vcombine.low %v665_v30, %v677_v32  ;;  %v4918_v50 = vcombine.high %v683_v41, %v695_v42  ;;  %v462_v30 = vld [vmem:[#allocation3 + $0x3a8] sm:$0xff]  ;;  %v4655_v32 = vcombine.low %v420_v31, %v432_v19  ;;  %v480_v41 = vld [vmem:[#allocation3 + $0x438] sm:$0xff] }
 0x1d4   : > { %2931 = vmatprep.subr.bf16.mxu1 %v4750_v47  ;;  %3177 = vmatprep.subr.bf16.mxu0 %v4762_v49  ;;  %v4930_v47 = vcombine.high %v689_v43, %v701_v39  ;;  %v707_v49 = vld [vmem:[#allocation3 + $0xb50] sm:$0xff]  ;;  %v474_v42 = vld [vmem:[#allocation3 + $0x408] sm:$0xff] }
 0x1d5   : > { %v4941_v62 = vcombine.low %v707_v49, %v719_v52 }
 0x1db   : > { %2932 = vmatpush1.bf16.xpose.msra.mxu1 %v4749_v55  ;;  %3178 = vmatpush1.bf16.xpose.msra.mxu0 %v4761_v56  ;;  %v4929_v55 = vcombine.low %v689_v43, %v701_v39  ;;  %v4942_v56 = vcombine.high %v707_v49, %v719_v52  ;;  %v486_v43 = vld [vmem:[#allocation3 + $0x468] sm:$0xff]  ;;  %v504_v49 = vld [vmem:[#allocation3 + $0x4f8] sm:$0xff] }
 0x1dc   : > { %2933 = vmatprep.subr.bf16.mxu1 %v4774_v57  ;;  %3179 = vmatprep.subr.bf16.mxu0 %v4786_v58  ;;  %v4954_v57 = vcombine.high %v713_v51, %v725_v53  ;;  %v348_v58 = vld [vmem:[#allocation3 + $0x18] sm:$0xff]  ;;  %v498_v52 = vld [vmem:[#allocation3 + $0x4c8] sm:$0xff] }
 0x1e3   : > { %2934 = vmatpush1.bf16.xpose.msra.mxu1 %v4773_v63  ;;  %3180 = vmatpush1.bf16.xpose.msra.mxu0 %v4785_v0  ;;  %v4953_v63 = vcombine.low %v713_v51, %v725_v53  ;;  %v4584_v0 = vcombine.high %v348_v58, %v360_v59  ;;  %v510_v51 = vld [vmem:[#allocation3 + $0x528] sm:$0xff] }
 0x1e4   : > { %2935 = vmatprep.subr.bf16.mxu1 %v4798_v1  ;;  %3181 = vmatprep.subr.bf16.mxu0 %v4810_v2  ;;  %v4596_v1 = vcombine.high %v354_v37, %v366_v61  ;;  %v372_v2 = vld [vmem:[#allocation3 + $0xd8] sm:$0xff] }
 0x1eb   : > { %2936 = vmatpush1.bf16.xpose.msra.mxu1 %v4797_v7  ;;  %3182 = vmatpush1.bf16.xpose.msra.mxu0 %v4809_v8  ;;  %v4583_v7 = vcombine.low %v348_v58, %v360_v59  ;;  %v6015_v8 = vrot.slane %v5991_v36, %v5936_v35  ;;  %v408_v36 = vld [vmem:[#allocation3 + $0x1f8] sm:$0xff]  ;;  %v522_v59 = vld [vmem:[#allocation3 + $0x588] sm:$0xff] }
 0x1ec   : > { %2937 = vmatprep.subr.bf16.mxu1 %v4822_v9  ;;  %3183 = vmatprep.subr.bf16.mxu0 %v4834_v10  ;;  %v4595_v9 = vcombine.low %v354_v37, %v366_v61  ;;  %v4608_v10 = vcombine.high %v372_v2, %v384_v3  ;;  %v4632_v60 = vcombine.high %v396_v45, %v408_v36  ;;  %v528_v58 = vld [vmem:[#allocation3 + $0x5b8] sm:$0xff]  ;;  %v534_v37 = vld [vmem:[#allocation3 + $0x5e8] sm:$0xff] }
 0x1ed   : > { %v4631_v22 = vcombine.low %v396_v45, %v408_v36  ;;  %v582_v45 = vld [vmem:[#allocation3 + $0x768] sm:$0xff] }
 0x1f3   : > { %2938 = vmatpush1.bf16.xpose.msra.mxu1 %v4821_v15  ;;  %3184 = vmatpush1.bf16.xpose.msra.mxu0 %v4833_v16  ;;  %v414_v15 = vld [vmem:[#allocation3 + $0x228] sm:$0xff]  ;;  %v4607_v16 = vcombine.low %v372_v2, %v384_v3  ;;  %v552_v2 = vld [vmem:[#allocation3 + $0x678] sm:$0xff] }
 0x1f4   : > { %2939 = vmatprep.subr.bf16.mxu1 %v4846_v17  ;;  %3185 = vmatprep.subr.bf16.mxu0 %v4858_v18  ;;  %v4619_v17 = vcombine.low %v378_v5, %v390_v6  ;;  %v4644_v18 = vcombine.high %v402_v14, %v414_v15  ;;  %v546_v3 = vld [vmem:[#allocation3 + $0x648] sm:$0xff] }
 0x1f5   : > { %v558_v5 = vld [vmem:[#allocation3 + $0x6a8] sm:$0xff] }
 0x1fb   : > { %2940 = vmatpush1.bf16.xpose.msra.mxu1 %v4845_v23  ;;  %3186 = vmatpush1.bf16.xpose.msra.mxu0 %v4857_v24  ;;  %v4643_v23 = vcombine.low %v402_v14, %v414_v15  ;;  %v4656_v24 = vcombine.high %v420_v31, %v432_v19  ;;  %v4787_v14 = vcombine.low %v546_v3, %v558_v5  ;;  %v606_v31 = vld [vmem:[#allocation3 + $0x828] sm:$0xff] }
 0x1fc   : > { %2941 = vmatprep.subr.bf16.mxu1 %v4870_v25  ;;  %3187 = vmatprep.subr.bf16.mxu0 %v4882_v26  ;;  %v4668_v25 = vcombine.high %v426_v20, %v438_v21  ;;  %v444_v26 = vld [vmem:[#allocation3 + $0x318] sm:$0xff] }
 0x1fd   : > { %v4679_v39 = vcombine.low %v444_v26, %v456_v28 }
 0x203   : > { %2942 = vmatpush1.bf16.xpose.msra.mxu1 %v4869_v33  ;;  %3188 = vmatpush1.bf16.xpose.msra.mxu0 %v4881_v34  ;;  %v4667_v33 = vcombine.low %v426_v20, %v438_v21  ;;  %v4680_v34 = vcombine.high %v444_v26, %v456_v28  ;;  %v630_v26 = vld [vmem:[#allocation3 + $0x8e8] sm:$0xff] }
 0x204   : > { %2943 = vmatprep.subr.bf16.mxu1 %v4894_v38  ;;  %3189 = vmatprep.subr.bf16.mxu0 %v4906_v40  ;;  %v4692_v38 = vcombine.high %v450_v29, %v462_v30  ;;  %v468_v40 = vld [vmem:[#allocation3 + $0x3d8] sm:$0xff] }
 0x205   : > { %v4703_v53 = vcombine.low %v468_v40, %v480_v41 }
 0x20b   : > { %2944 = vmatpush1.bf16.xpose.msra.mxu1 %v4893_v48  ;;  %3190 = vmatpush1.bf16.xpose.msra.mxu0 %v4905_v44  ;;  %v4691_v48 = vcombine.low %v450_v29, %v462_v30  ;;  %v4704_v44 = vcombine.high %v468_v40, %v480_v41  ;;  %v654_v40 = vld [vmem:[#allocation3 + $0x9a8] sm:$0xff] }
 0x20c   : > { %2945 = vmatprep.subr.bf16.mxu1 %v4918_v50  ;;  %3191 = vmatprep.subr.bf16.mxu0 %v4930_v47  ;;  %v4716_v50 = vcombine.high %v474_v42, %v486_v43  ;;  %v492_v47 = vld [vmem:[#allocation3 + $0x498] sm:$0xff] }
 0x20d   : > { %v4727_v61 = vcombine.low %v492_v47, %v504_v49 }
 0x213   : > { %2946 = vmatpush1.bf16.xpose.msra.mxu1 %v4917_v54  ;;  %3192 = vmatpush1.bf16.xpose.msra.mxu0 %v4929_v55  ;;  %v4715_v54 = vcombine.low %v474_v42, %v486_v43  ;;  %v4728_v55 = vcombine.high %v492_v47, %v504_v49  ;;  %v678_v47 = vld [vmem:[#allocation3 + $0xa68] sm:$0xff] }
 0x214   : > { %2947 = vmatprep.subr.bf16.mxu1 %v4942_v56  ;;  %3193 = vmatprep.subr.bf16.mxu0 %v4954_v57  ;;  %v4740_v56 = vcombine.high %v498_v52, %v510_v51  ;;  %v516_v57 = vld [vmem:[#allocation3 + $0x558] sm:$0xff] }
 0x215   : > { %v4751_v6 = vcombine.low %v516_v57, %v528_v58 }
 0x21b   : > { %2948 = vmatpush1.bf16.xpose.msra.mxu1 %v4941_v62  ;;  %3194 = vmatpush1.bf16.xpose.msra.mxu0 %v4953_v63  ;;  %v4739_v62 = vcombine.low %v498_v52, %v510_v51  ;;  %v4752_v63 = vcombine.high %v516_v57, %v528_v58  ;;  %v702_v57 = vld [vmem:[#allocation3 + $0xb28] sm:$0xff] }
 0x21c   : > { %2958 = vmatprep.subr.bf16.mxu1 %v4584_v0  ;;  %3204 = vmatprep.subr.bf16.mxu0 %v4596_v1  ;;  %v4764_v0 = vcombine.high %v522_v59, %v534_v37  ;;  %v540_v1 = vld [vmem:[#allocation3 + $0x618] sm:$0xff] }
 0x21d   : > { %v4775_v36 = vcombine.low %v540_v1, %v552_v2 }
 0x222   : > { %2950 = vmatmul.mubr.bf16.vlgmr.msra.gmra.mrb[0].mxu1 %v6011_v4  ;;  %3196 = vmatmul.mubr.bf16.vlgmr.msra.gmra.mrb[0].mxu0 %v6015_v8 }
 0x223   : > { %2959 = vmatpush1.bf16.xpose.msra.mxu1 %v4583_v7  ;;  %3205 = vmatpush1.bf16.xpose.msra.mxu0 %v4595_v9  ;;  %v4763_v7 = vcombine.low %v522_v59, %v534_v37  ;;  %v4776_v9 = vcombine.high %v540_v1, %v552_v2  ;;  %v726_v1 = vld [vmem:[#allocation3 + $0xbe8] sm:$0xff] }
 0x224   : > { %2960 = vmatprep.subr.bf16.mxu1 %v4608_v10  ;;  %3206 = vmatprep.subr.bf16.mxu0 %v4620_v11  ;;  %v4788_v10 = vcombine.high %v546_v3, %v558_v5  ;;  %v564_v11 = vld [vmem:[#allocation3 + $0x6d8] sm:$0xff] }
 0x225   : > { %2990 = vmatprep.mubr.bf16.mxu1 %v792_v12  ;;  %3236 = vmatprep.mubr.bf16.mxu0 %v889_v13  ;;  %v576_v12 = vld [vmem:[#allocation3 + $0x738] sm:$0xff]  ;;  %v570_v13 = vld [vmem:[#allocation3 + $0x708] sm:$0xff] }
 0x226   : > { %v4800_v15 = vcombine.high %v564_v11, %v576_v12  ;;  %v4799_v19 = vcombine.low %v564_v11, %v576_v12  ;;  %v4811_v20 = vcombine.low %v570_v13, %v582_v45  ;;  %v367_v11 = vld [vmem:[#allocation3 + $0xb0] sm:$0xff] }
 0x22b   : > { %2961 = vmatpush1.bf16.xpose.msra.mxu1 %v4607_v16  ;;  %3207 = vmatpush1.bf16.xpose.msra.mxu0 %v4619_v17  ;;  %v4812_v16 = vcombine.high %v570_v13, %v582_v45  ;;  %v588_v17 = vld [vmem:[#allocation3 + $0x798] sm:$0xff] }
 0x22c   : > { %2962 = vmatprep.subr.bf16.mxu1 %v4632_v60  ;;  %3208 = vmatprep.subr.bf16.mxu0 %v4644_v18  ;;  %v600_v60 = vld [vmem:[#allocation3 + $0x7f8] sm:$0xff]  ;;  %v594_v18 = vld [vmem:[#allocation3 + $0x7c8] sm:$0xff] }
 0x22d   : > { %v4824_v21 = vcombine.high %v588_v17, %v600_v60  ;;  %v4823_v28 = vcombine.low %v588_v17, %v600_v60  ;;  %v4835_v29 = vcombine.low %v594_v18, %v606_v31  ;;  %v385_v17 = vld [vmem:[#allocation3 + $0x140] sm:$0xff] }
 0x233   : > { %2963 = vmatpush1.bf16.xpose.msra.mxu1 %v4631_v22  ;;  %3209 = vmatpush1.bf16.xpose.msra.mxu0 %v4643_v23  ;;  %v4836_v22 = vcombine.high %v594_v18, %v606_v31  ;;  %v612_v23 = vld [vmem:[#allocation3 + $0x858] sm:$0xff]  ;;  %v790_v18 = vcombine.high %v6011_v4, %v6011_v4  ;;  %v379_v31 = vld [vmem:[#allocation3 + $0x110] sm:$0xff] }
 0x234   : > { %2964 = vmatprep.subr.bf16.mxu1 %v4656_v24  ;;  %3210 = vmatprep.subr.bf16.mxu0 %v4668_v25  ;;  %v624_v24 = vld [vmem:[#allocation3 + $0x8b8] sm:$0xff]  ;;  %v618_v25 = vld [vmem:[#allocation3 + $0x888] sm:$0xff] }
 0x235   : > { %v4848_v30 = vcombine.high %v612_v23, %v624_v24  ;;  %v4847_v41 = vcombine.low %v612_v23, %v624_v24  ;;  %v4859_v42 = vcombine.low %v618_v25, %v630_v26 }
 0x23b   : > { %2965 = vmatpush1.bf16.xpose.msra.mxu1 %v4655_v32  ;;  %3211 = vmatpush1.bf16.xpose.msra.mxu0 %v4667_v33  ;;  %v4860_v32 = vcombine.high %v618_v25, %v630_v26  ;;  %v636_v33 = vld [vmem:[#allocation3 + $0x918] sm:$0xff] }
 0x23c   : > { %2966 = vmatprep.subr.bf16.mxu1 %v4680_v34  ;;  %3212 = vmatprep.subr.bf16.mxu0 %v4692_v38  ;;  %v648_v34 = vld [vmem:[#allocation3 + $0x978] sm:$0xff]  ;;  %v642_v38 = vld [vmem:[#allocation3 + $0x948] sm:$0xff] }
 0x23d   : > { %v4872_v43 = vcombine.high %v636_v33, %v648_v34  ;;  %v4871_v49 = vcombine.low %v636_v33, %v648_v34  ;;  %v4883_v52 = vcombine.low %v642_v38, %v654_v40 }
 0x243   : > { %2967 = vmatpush1.bf16.xpose.msra.mxu1 %v4679_v39  ;;  %3213 = vmatpush1.bf16.xpose.msra.mxu0 %v4691_v48  ;;  %v4884_v39 = vcombine.high %v642_v38, %v654_v40  ;;  %v660_v48 = vld [vmem:[#allocation3 + $0x9d8] sm:$0xff]  ;;  %v421_v40 = vld [vmem:[#allocation3 + $0x260] sm:$0xff] }
 0x244   : > { %2968 = vmatprep.subr.bf16.mxu1 %v4704_v44  ;;  %3214 = vmatprep.subr.bf16.mxu0 %v4716_v50  ;;  %v672_v44 = vld [vmem:[#allocation3 + $0xa38] sm:$0xff]  ;;  %v666_v50 = vld [vmem:[#allocation3 + $0xa08] sm:$0xff] }
 0x245   : > { %v4896_v51 = vcombine.high %v660_v48, %v672_v44  ;;  %v4895_v58 = vcombine.low %v660_v48, %v672_v44  ;;  %v4907_v59 = vcombine.low %v666_v50, %v678_v47 }
 0x24b   : > { %2969 = vmatpush1.bf16.xpose.msra.mxu1 %v4703_v53  ;;  %3215 = vmatpush1.bf16.xpose.msra.mxu0 %v4715_v54  ;;  %v4908_v53 = vcombine.high %v666_v50, %v678_v47  ;;  %v684_v54 = vld [vmem:[#allocation3 + $0xa98] sm:$0xff]  ;;  %v445_v47 = vld [vmem:[#allocation3 + $0x320] sm:$0xff] }
 0x24c   : > { %2970 = vmatprep.subr.bf16.mxu1 %v4728_v55  ;;  %3216 = vmatprep.subr.bf16.mxu0 %v4740_v56  ;;  %v696_v55 = vld [vmem:[#allocation3 + $0xaf8] sm:$0xff]  ;;  %v690_v56 = vld [vmem:[#allocation3 + $0xac8] sm:$0xff] }
 0x24d   : > { %v4920_v37 = vcombine.high %v684_v54, %v696_v55  ;;  %v4919_v2 = vcombine.low %v684_v54, %v696_v55  ;;  %v4931_v3 = vcombine.low %v690_v56, %v702_v57 }
 0x253   : > { %2971 = vmatpush1.bf16.xpose.msra.mxu1 %v4727_v61  ;;  %3217 = vmatpush1.bf16.xpose.msra.mxu0 %v4739_v62  ;;  %v4932_v61 = vcombine.high %v690_v56, %v702_v57  ;;  %v708_v62 = vld [vmem:[#allocation3 + $0xb58] sm:$0xff]  ;;  %v469_v57 = vld [vmem:[#allocation3 + $0x3e0] sm:$0xff] }
 0x254   : > { %2972 = vmatprep.subr.bf16.mxu1 %v4752_v63  ;;  %3218 = vmatprep.subr.bf16.mxu0 %v4764_v0  ;;  %v720_v63 = vld [vmem:[#allocation3 + $0xbb8] sm:$0xff]  ;;  %v714_v0 = vld [vmem:[#allocation3 + $0xb88] sm:$0xff] }
 0x255   : > { %v4944_v5 = vcombine.high %v708_v62, %v720_v63  ;;  %v4943_v12 = vcombine.low %v708_v62, %v720_v63  ;;  %v4955_v13 = vcombine.low %v714_v0, %v726_v1 }
 0x25b   : > { %2973 = vmatpush1.bf16.xpose.msra.mxu1 %v4751_v6  ;;  %3219 = vmatpush1.bf16.xpose.msra.mxu0 %v4763_v7  ;;  %v4956_v6 = vcombine.high %v714_v0, %v726_v1  ;;  %v349_v7 = vld [vmem:[#allocation3 + $0x20] sm:$0xff] }
 0x25c   : > { %2974 = vmatprep.subr.bf16.mxu1 %v4776_v9  ;;  %3220 = vmatprep.subr.bf16.mxu0 %v4788_v10  ;;  %v361_v9 = vld [vmem:[#allocation3 + $0x80] sm:$0xff]  ;;  %v355_v10 = vld [vmem:[#allocation3 + $0x50] sm:$0xff] }
 0x25d   : > { %v4586_v45 = vcombine.high %v349_v7, %v361_v9  ;;  %v4597_v23 = vcombine.low %v355_v10, %v367_v11  ;;  %v493_v1 = vld [vmem:[#allocation3 + $0x4a0] sm:$0xff] }
 0x263   : > { %2975 = vmatpush1.bf16.xpose.msra.mxu1 %v4775_v36  ;;  %3221 = vmatpush1.bf16.xpose.msra.mxu0 %v4787_v14  ;;  %v4598_v36 = vcombine.high %v355_v10, %v367_v11  ;;  %v842_v14 = vcombine.high %v5987_v46, %v5987_v46  ;;  %v517_v11 = vld [vmem:[#allocation3 + $0x560] sm:$0xff] }
 0x264   : > { %2976 = vmatprep.subr.bf16.mxu1 %v4800_v15  ;;  %3222 = vmatprep.subr.bf16.mxu0 %v4812_v16  ;;  %v6028_v15 = vld.sshfl [vmem:[%s6278_s0 + $0x8] sm:$0xff pattern:$0x75316420] }
 0x265   : > { %v373_v16 = vld [vmem:[#allocation3 + $0xe0] sm:$0xff]  ;;  %v6031_v60 = vrot.slane %v842_v14, %v5936_v35  ;;  %v808_v46 = vcombine.high %v6028_v15, %v6028_v15 }
 0x266   : > { %v4610_v24 = vcombine.high %v373_v16, %v385_v17 }
 0x267   : > { %v6042_v26 = vrot.slane %v808_v46, %v5936_v35  ;;  %v559_v46 = vld [vmem:[#allocation3 + $0x6b0] sm:$0xff] }
 0x26b   : > { %2977 = vmatpush1.bf16.xpose.msra.mxu1 %v4799_v19  ;;  %3223 = vmatpush1.bf16.xpose.msra.mxu0 %v4811_v20  ;;  %v391_v19 = vld [vmem:[#allocation3 + $0x170] sm:$0xff]  ;;  %v4585_v20 = vcombine.low %v349_v7, %v361_v9 }
 0x26c   : > { %2978 = vmatprep.subr.bf16.mxu1 %v4824_v21  ;;  %3224 = vmatprep.subr.bf16.mxu0 %v4836_v22  ;;  %v887_v21 = vcombine.high %v6015_v8, %v6015_v8  ;;  %v858_v22 = vcombine.high %v6031_v60, %v6031_v60  ;;  %v4622_v25 = vcombine.high %v379_v31, %v391_v19  ;;  %v409_v8 = vld [vmem:[#allocation3 + $0x200] sm:$0xff] }
 0x26d   : > { %v4621_v33 = vcombine.low %v379_v31, %v391_v19  ;;  %v553_v31 = vld [vmem:[#allocation3 + $0x680] sm:$0xff]  ;;  %v547_v19 = vld [vmem:[#allocation3 + $0x650] sm:$0xff] }
 0x26e   : > { %v6045_v4 = vrot.slane %v858_v22, %v5936_v35 }
 0x273   : > { %2979 = vmatpush1.bf16.xpose.msra.mxu1 %v4823_v28  ;;  %3225 = vmatpush1.bf16.xpose.msra.mxu0 %v4835_v29  ;;  %v397_v28 = vld [vmem:[#allocation3 + $0x1a0] sm:$0xff]  ;;  %v403_v29 = vld [vmem:[#allocation3 + $0x1d0] sm:$0xff] }
 0x274   : > { %2980 = vmatprep.subr.bf16.mxu1 %v4848_v30  ;;  %3226 = vmatprep.subr.bf16.mxu0 %v4860_v32  ;;  %v415_v30 = vld [vmem:[#allocation3 + $0x230] sm:$0xff]  ;;  %v4609_v32 = vcombine.low %v373_v16, %v385_v17  ;;  %v4634_v34 = vcombine.high %v397_v28, %v409_v8 }
 0x275   : > { %v4646_v38 = vcombine.high %v403_v29, %v415_v30  ;;  %v4645_v48 = vcombine.low %v403_v29, %v415_v30  ;;  %v4789_v30 = vcombine.low %v547_v19, %v559_v46 }
 0x27b   : > { %2981 = vmatpush1.bf16.xpose.msra.mxu1 %v4847_v41  ;;  %3227 = vmatpush1.bf16.xpose.msra.mxu0 %v4859_v42  ;;  %v433_v41 = vld [vmem:[#allocation3 + $0x2c0] sm:$0xff]  ;;  %v427_v42 = vld [vmem:[#allocation3 + $0x290] sm:$0xff] }
 0x27c   : > { %2982 = vmatprep.subr.bf16.mxu1 %v4872_v43  ;;  %3228 = vmatprep.subr.bf16.mxu0 %v4884_v39  ;;  %v439_v43 = vld [vmem:[#allocation3 + $0x2f0] sm:$0xff]  ;;  %v4633_v39 = vcombine.low %v397_v28, %v409_v8  ;;  %v4658_v44 = vcombine.high %v421_v40, %v433_v41 }
 0x27d   : > { %v4670_v50 = vcombine.high %v427_v42, %v439_v43  ;;  %v4669_v54 = vcombine.low %v427_v42, %v439_v43  ;;  %v571_v28 = vld [vmem:[#allocation3 + $0x710] sm:$0xff] }
 0x27e   : > { %v583_v8 = vld [vmem:[#allocation3 + $0x770] sm:$0xff] }
 0x27f   : > { %v4813_v43 = vcombine.low %v571_v28, %v583_v8 }
 0x283   : > { %2983 = vmatpush1.bf16.xpose.msra.mxu1 %v4871_v49  ;;  %3229 = vmatpush1.bf16.xpose.msra.mxu0 %v4883_v52  ;;  %v457_v49 = vld [vmem:[#allocation3 + $0x380] sm:$0xff]  ;;  %v451_v52 = vld [vmem:[#allocation3 + $0x350] sm:$0xff] }
 0x284   : > { %2984 = vmatprep.subr.bf16.mxu1 %v4896_v51  ;;  %3230 = vmatprep.subr.bf16.mxu0 %v4908_v53  ;;  %v463_v51 = vld [vmem:[#allocation3 + $0x3b0] sm:$0xff]  ;;  %v4657_v53 = vcombine.low %v421_v40, %v433_v41  ;;  %v4682_v55 = vcombine.high %v445_v47, %v457_v49 }
 0x285   : > { %v4694_v56 = vcombine.high %v451_v52, %v463_v51  ;;  %v4693_v62 = vcombine.low %v451_v52, %v463_v51  ;;  %v595_v40 = vld [vmem:[#allocation3 + $0x7d0] sm:$0xff] }
 0x286   : > { %v607_v41 = vld [vmem:[#allocation3 + $0x830] sm:$0xff] }
 0x287   : > { %v4837_v51 = vcombine.low %v595_v40, %v607_v41 }
 0x28b   : > { %2985 = vmatpush1.bf16.xpose.msra.mxu1 %v4895_v58  ;;  %3231 = vmatpush1.bf16.xpose.msra.mxu0 %v4907_v59  ;;  %v481_v58 = vld [vmem:[#allocation3 + $0x440] sm:$0xff]  ;;  %v475_v59 = vld [vmem:[#allocation3 + $0x410] sm:$0xff] }
 0x28c   : > { %2986 = vmatprep.subr.bf16.mxu1 %v4920_v37  ;;  %3232 = vmatprep.subr.bf16.mxu0 %v4932_v61  ;;  %v487_v37 = vld [vmem:[#allocation3 + $0x470] sm:$0xff]  ;;  %v4681_v61 = vcombine.low %v445_v47, %v457_v49  ;;  %v4706_v63 = vcombine.high %v469_v57, %v481_v58 }
 0x28d   : > { %v4718_v0 = vcombine.high %v475_v59, %v487_v37  ;;  %v4717_v7 = vcombine.low %v475_v59, %v487_v37  ;;  %v619_v47 = vld [vmem:[#allocation3 + $0x890] sm:$0xff] }
 0x28e   : > { %v631_v49 = vld [vmem:[#allocation3 + $0x8f0] sm:$0xff] }
 0x28f   : > { %v4861_v37 = vcombine.low %v619_v47, %v631_v49 }
 0x293   : > { %2987 = vmatpush1.bf16.xpose.msra.mxu1 %v4919_v2  ;;  %3233 = vmatpush1.bf16.xpose.msra.mxu0 %v4931_v3  ;;  %v505_v2 = vld [vmem:[#allocation3 + $0x500] sm:$0xff]  ;;  %v499_v3 = vld [vmem:[#allocation3 + $0x4d0] sm:$0xff] }
 0x294   : > { %2988 = vmatprep.subr.bf16.mxu1 %v4944_v5  ;;  %3234 = vmatprep.subr.bf16.mxu0 %v4956_v6  ;;  %v511_v5 = vld [vmem:[#allocation3 + $0x530] sm:$0xff]  ;;  %v4705_v6 = vcombine.low %v469_v57, %v481_v58  ;;  %v4730_v9 = vcombine.high %v493_v1, %v505_v2 }
 0x295   : > { %v4742_v10 = vcombine.high %v499_v3, %v511_v5  ;;  %v4741_v14 = vcombine.low %v499_v3, %v511_v5  ;;  %v643_v57 = vld [vmem:[#allocation3 + $0x950] sm:$0xff] }
 0x296   : > { %v655_v58 = vld [vmem:[#allocation3 + $0x9b0] sm:$0xff] }
 0x297   : > { %v4885_v5 = vcombine.low %v643_v57, %v655_v58 }
 0x29b   : > { %2989 = vmatpush1.bf16.xpose.msra.mxu1 %v4943_v12  ;;  %3235 = vmatpush1.bf16.xpose.msra.mxu0 %v4955_v13  ;;  %v529_v12 = vld [vmem:[#allocation3 + $0x5c0] sm:$0xff]  ;;  %v523_v13 = vld [vmem:[#allocation3 + $0x590] sm:$0xff] }
 0x29c   : > { %2999 = vmatprep.subr.bf16.mxu1 %v4586_v45  ;;  %3245 = vmatprep.subr.bf16.mxu0 %v4598_v36  ;;  %v535_v45 = vld [vmem:[#allocation3 + $0x5f0] sm:$0xff]  ;;  %v4729_v36 = vcombine.low %v493_v1, %v505_v2  ;;  %v4754_v16 = vcombine.high %v517_v11, %v529_v12 }
 0x29d   : > { %v4766_v17 = vcombine.high %v523_v13, %v535_v45  ;;  %v667_v1 = vld [vmem:[#allocation3 + $0xa10] sm:$0xff] }
 0x29e   : > { %v679_v2 = vld [vmem:[#allocation3 + $0xa70] sm:$0xff] }
 0x2a2   : > { %2991 = vmatmul.mubr.bf16.vlgmr.msra.gmra.mrb[0].mxu1 %v790_v18  ;;  %3237 = vmatmul.mubr.bf16.vlgmr.msra.gmra.mrb[0].mxu0 %v887_v21  ;;  %v541_v18 = vld [vmem:[#allocation3 + $0x620] sm:$0xff]  ;;  %v4765_v21 = vcombine.low %v523_v13, %v535_v45  ;;  %v4909_v45 = vcombine.low %v667_v1, %v679_v2 }
 0x2a3   : > { %3000 = vmatpush1.bf16.xpose.msra.mxu1 %v4585_v20  ;;  %3246 = vmatpush1.bf16.xpose.msra.mxu0 %v4597_v23  ;;  %v4753_v20 = vcombine.low %v517_v11, %v529_v12  ;;  %v4778_v22 = vcombine.high %v541_v18, %v553_v31  ;;  %v4790_v23 = vcombine.high %v547_v19, %v559_v46  ;;  %v691_v11 = vld [vmem:[#allocation3 + $0xad0] sm:$0xff] }
 0x2a4   : > { %3001 = vmatprep.subr.bf16.mxu1 %v4610_v24  ;;  %3247 = vmatprep.subr.bf16.mxu0 %v4622_v25  ;;  %v565_v24 = vld [vmem:[#allocation3 + $0x6e0] sm:$0xff]  ;;  %v4777_v29 = vcombine.low %v541_v18, %v553_v31  ;;  %v703_v12 = vld [vmem:[#allocation3 + $0xb30] sm:$0xff] }
 0x2a5   : > { %3031 = vmatprep.mubr.bf16.mxu1 %v6042_v26  ;;  %3277 = vmatprep.mubr.bf16.mxu0 %v6045_v4  ;;  %v577_v25 = vld [vmem:[#allocation3 + $0x740] sm:$0xff]  ;;  %v715_v18 = vld [vmem:[#allocation3 + $0xb90] sm:$0xff]  ;;  %v4933_v46 = vcombine.low %v691_v11, %v703_v12 }
 0x2a6   : > { %v4801_v42 = vcombine.low %v565_v24, %v577_v25  ;;  %v727_v31 = vld [vmem:[#allocation3 + $0xbf0] sm:$0xff] }
 0x2ab   : > { %3002 = vmatpush1.bf16.xpose.msra.mxu1 %v4609_v32  ;;  %3248 = vmatpush1.bf16.xpose.msra.mxu0 %v4621_v33  ;;  %v4802_v32 = vcombine.high %v565_v24, %v577_v25  ;;  %v4814_v33 = vcombine.high %v571_v28, %v583_v8  ;;  %v356_v24 = vld [vmem:[#allocation3 + $0x58] sm:$0xff]  ;;  %v4957_v8 = vcombine.low %v715_v18, %v727_v31 }
 0x2ac   : > { %3003 = vmatprep.subr.bf16.mxu1 %v4634_v34  ;;  %3249 = vmatprep.subr.bf16.mxu0 %v4646_v38  ;;  %v589_v34 = vld [vmem:[#allocation3 + $0x7a0] sm:$0xff]  ;;  %v368_v25 = vld [vmem:[#allocation3 + $0xb8] sm:$0xff] }
 0x2ad   : > { %v601_v38 = vld [vmem:[#allocation3 + $0x800] sm:$0xff] }
 0x2ae   : > { %v4825_v52 = vcombine.low %v589_v34, %v601_v38 }
 0x2b3   : > { %3004 = vmatpush1.bf16.xpose.msra.mxu1 %v4633_v39  ;;  %3250 = vmatpush1.bf16.xpose.msra.mxu0 %v4645_v48  ;;  %v4826_v39 = vcombine.high %v589_v34, %v601_v38  ;;  %v4838_v48 = vcombine.high %v595_v40, %v607_v41  ;;  %v6051_v34 = vrot.slane %v6028_v15, %v5936_v35  ;;  %v380_v38 = vld [vmem:[#allocation3 + $0x118] sm:$0xff]  ;;  %v398_v15 = vld [vmem:[#allocation3 + $0x1a8] sm:$0xff] }
 0x2b4   : > { %3005 = vmatprep.subr.bf16.mxu1 %v4658_v44  ;;  %3251 = vmatprep.subr.bf16.mxu0 %v4670_v50  ;;  %v613_v44 = vld [vmem:[#allocation3 + $0x860] sm:$0xff]  ;;  %v392_v40 = vld [vmem:[#allocation3 + $0x178] sm:$0xff] }
 0x2b5   : > { %v625_v50 = vld [vmem:[#allocation3 + $0x8c0] sm:$0xff] }
 0x2b6   : > { %v4849_v59 = vcombine.low %v613_v44, %v625_v50 }
 0x2bb   : > { %3006 = vmatpush1.bf16.xpose.msra.mxu1 %v4657_v53  ;;  %3252 = vmatpush1.bf16.xpose.msra.mxu0 %v4669_v54  ;;  %v4850_v53 = vcombine.high %v613_v44, %v625_v50  ;;  %v4862_v54 = vcombine.high %v619_v47, %v631_v49  ;;  %v840_v44 = vcombine.high %v6042_v26, %v6042_v26  ;;  %v404_v47 = vld [vmem:[#allocation3 + $0x1d8] sm:$0xff] }
 0x2bc   : > { %3007 = vmatprep.subr.bf16.mxu1 %v4682_v55  ;;  %3253 = vmatprep.subr.bf16.mxu0 %v4694_v56  ;;  %v637_v55 = vld [vmem:[#allocation3 + $0x920] sm:$0xff]  ;;  %v890_v50 = vcombine.high %v6045_v4, %v6045_v4  ;;  %v416_v49 = vld [vmem:[#allocation3 + $0x238] sm:$0xff]  ;;  %v422_v4 = vld [vmem:[#allocation3 + $0x268] sm:$0xff] }
 0x2bd   : > { %v649_v56 = vld [vmem:[#allocation3 + $0x980] sm:$0xff] }
 0x2be   : > { %v4873_v3 = vcombine.low %v637_v55, %v649_v56 }
 0x2c3   : > { %3008 = vmatpush1.bf16.xpose.msra.mxu1 %v4681_v61  ;;  %3254 = vmatpush1.bf16.xpose.msra.mxu0 %v4693_v62  ;;  %v4874_v61 = vcombine.high %v637_v55, %v649_v56  ;;  %v4886_v62 = vcombine.high %v643_v57, %v655_v58  ;;  %v428_v55 = vld [vmem:[#allocation3 + $0x298] sm:$0xff]  ;;  %v4647_v58 = vcombine.low %v404_v47, %v416_v49 }
 0x2c4   : > { %3009 = vmatprep.subr.bf16.mxu1 %v4706_v63  ;;  %3255 = vmatprep.subr.bf16.mxu0 %v4718_v0  ;;  %v661_v63 = vld [vmem:[#allocation3 + $0x9e0] sm:$0xff]  ;;  %v440_v56 = vld [vmem:[#allocation3 + $0x2f8] sm:$0xff] }
 0x2c5   : > { %v673_v0 = vld [vmem:[#allocation3 + $0xa40] sm:$0xff] }
 0x2c6   : > { %v4897_v13 = vcombine.low %v661_v63, %v673_v0 }
 0x2cb   : > { %3010 = vmatpush1.bf16.xpose.msra.mxu1 %v4705_v6  ;;  %3256 = vmatpush1.bf16.xpose.msra.mxu0 %v4717_v7  ;;  %v4898_v6 = vcombine.high %v661_v63, %v673_v0  ;;  %v4910_v7 = vcombine.high %v667_v1, %v679_v2  ;;  %v452_v63 = vld [vmem:[#allocation3 + $0x358] sm:$0xff]  ;;  %v4671_v2 = vcombine.low %v428_v55, %v440_v56 }
 0x2cc   : > { %3011 = vmatprep.subr.bf16.mxu1 %v4730_v9  ;;  %3257 = vmatprep.subr.bf16.mxu0 %v4742_v10  ;;  %v685_v9 = vld [vmem:[#allocation3 + $0xaa0] sm:$0xff]  ;;  %v464_v0 = vld [vmem:[#allocation3 + $0x3b8] sm:$0xff] }
 0x2cd   : > { %v697_v10 = vld [vmem:[#allocation3 + $0xb00] sm:$0xff] }
 0x2ce   : > { %v4921_v19 = vcombine.low %v685_v9, %v697_v10 }
 0x2d3   : > { %3012 = vmatpush1.bf16.xpose.msra.mxu1 %v4729_v36  ;;  %3258 = vmatpush1.bf16.xpose.msra.mxu0 %v4741_v14  ;;  %v4922_v36 = vcombine.high %v685_v9, %v697_v10  ;;  %v4934_v14 = vcombine.high %v691_v11, %v703_v12  ;;  %v476_v9 = vld [vmem:[#allocation3 + $0x418] sm:$0xff]  ;;  %v4695_v12 = vcombine.low %v452_v63, %v464_v0 }
 0x2d4   : > { %3013 = vmatprep.subr.bf16.mxu1 %v4754_v16  ;;  %3259 = vmatprep.subr.bf16.mxu0 %v4766_v17  ;;  %v709_v16 = vld [vmem:[#allocation3 + $0xb60] sm:$0xff]  ;;  %v488_v10 = vld [vmem:[#allocation3 + $0x478] sm:$0xff] }
 0x2d5   : > { %v721_v17 = vld [vmem:[#allocation3 + $0xbc0] sm:$0xff] }
 0x2d6   : > { %v4945_v28 = vcombine.low %v709_v16, %v721_v17 }
 0x2db   : > { %3014 = vmatpush1.bf16.xpose.msra.mxu1 %v4753_v20  ;;  %3260 = vmatpush1.bf16.xpose.msra.mxu0 %v4765_v21  ;;  %v4946_v20 = vcombine.high %v709_v16, %v721_v17  ;;  %v4958_v21 = vcombine.high %v715_v18, %v727_v31  ;;  %v500_v16 = vld [vmem:[#allocation3 + $0x4d8] sm:$0xff]  ;;  %v4719_v31 = vcombine.low %v476_v9, %v488_v10 }
 0x2dc   : > { %3015 = vmatprep.subr.bf16.mxu1 %v4778_v22  ;;  %3261 = vmatprep.subr.bf16.mxu0 %v4790_v23  ;;  %v350_v22 = vld [vmem:[#allocation3 + $0x28] sm:$0xff]  ;;  %v512_v17 = vld [vmem:[#allocation3 + $0x538] sm:$0xff] }
 0x2dd   : > { %v362_v23 = vld [vmem:[#allocation3 + $0x88] sm:$0xff] }
 0x2de   : > { %v4587_v41 = vcombine.low %v350_v22, %v362_v23 }
 0x2e3   : > { %3016 = vmatpush1.bf16.xpose.msra.mxu1 %v4777_v29  ;;  %3262 = vmatpush1.bf16.xpose.msra.mxu0 %v4789_v30  ;;  %v4588_v29 = vcombine.high %v350_v22, %v362_v23  ;;  %v4600_v30 = vcombine.high %v356_v24, %v368_v25  ;;  %v524_v22 = vld [vmem:[#allocation3 + $0x598] sm:$0xff] }
 0x2e4   : > { %3017 = vmatprep.subr.bf16.mxu1 %v4802_v32  ;;  %3263 = vmatprep.subr.bf16.mxu0 %v4814_v33  ;;  %v374_v32 = vld [vmem:[#allocation3 + $0xe8] sm:$0xff]  ;;  %v536_v23 = vld [vmem:[#allocation3 + $0x5f8] sm:$0xff] }
 0x2e5   : > { %v386_v33 = vld [vmem:[#allocation3 + $0x148] sm:$0xff] }
 0x2eb   : > { %3018 = vmatpush1.bf16.xpose.msra.mxu1 %v4801_v42  ;;  %3264 = vmatpush1.bf16.xpose.msra.mxu0 %v4813_v43  ;;  %v6055_v42 = vrot.slane %v6031_v60, %v5936_v35  ;;  %v4599_v43 = vcombine.low %v356_v24, %v368_v25  ;;  %v410_v60 = vld [vmem:[#allocation3 + $0x208] sm:$0xff]  ;;  %v4743_v25 = vcombine.low %v500_v16, %v512_v17 }
 0x2ec   : > { %3019 = vmatprep.subr.bf16.mxu1 %v4826_v39  ;;  %3265 = vmatprep.subr.bf16.mxu0 %v4838_v48  ;;  %v4612_v39 = vcombine.high %v374_v32, %v386_v33  ;;  %v4624_v48 = vcombine.high %v380_v38, %v392_v40  ;;  %v4636_v26 = vcombine.high %v398_v15, %v410_v60 }
 0x2ed   : > { %v4635_v57 = vcombine.low %v398_v15, %v410_v60 }
 0x2f3   : > { %3020 = vmatpush1.bf16.xpose.msra.mxu1 %v4825_v52  ;;  %3266 = vmatpush1.bf16.xpose.msra.mxu0 %v4837_v51  ;;  %v4611_v52 = vcombine.low %v374_v32, %v386_v33  ;;  %v4623_v51 = vcombine.low %v380_v38, %v392_v40  ;;  %v548_v32 = vld [vmem:[#allocation3 + $0x658] sm:$0xff]  ;;  %v4767_v40 = vcombine.low %v524_v22, %v536_v23 }
 0x2f4   : > { %3021 = vmatprep.subr.bf16.mxu1 %v4850_v53  ;;  %3267 = vmatprep.subr.bf16.mxu0 %v4862_v54  ;;  %v4648_v53 = vcombine.high %v404_v47, %v416_v49  ;;  %v434_v54 = vld [vmem:[#allocation3 + $0x2c8] sm:$0xff]  ;;  %v560_v33 = vld [vmem:[#allocation3 + $0x6b8] sm:$0xff] }
 0x2f5   : > { %v4659_v1 = vcombine.low %v422_v4, %v434_v54  ;;  %v4791_v60 = vcombine.low %v548_v32, %v560_v33 }
 0x2fb   : > { %3022 = vmatpush1.bf16.xpose.msra.mxu1 %v4849_v59  ;;  %3268 = vmatpush1.bf16.xpose.msra.mxu0 %v4861_v37  ;;  %v4660_v59 = vcombine.high %v422_v4, %v434_v54  ;;  %v4672_v37 = vcombine.high %v428_v55, %v440_v56 }
 0x2fc   : > { %3023 = vmatprep.subr.bf16.mxu1 %v4874_v61  ;;  %3269 = vmatprep.subr.bf16.mxu0 %v4886_v62  ;;  %v446_v61 = vld [vmem:[#allocation3 + $0x328] sm:$0xff] }
 0x2fd   : > { %v458_v62 = vld [vmem:[#allocation3 + $0x388] sm:$0xff] }
 0x2fe   : > { %v4683_v11 = vcombine.low %v446_v61, %v458_v62 }
 0x303   : > { %3024 = vmatpush1.bf16.xpose.msra.mxu1 %v4873_v3  ;;  %3270 = vmatpush1.bf16.xpose.msra.mxu0 %v4885_v5  ;;  %v4684_v3 = vcombine.high %v446_v61, %v458_v62  ;;  %v4696_v5 = vcombine.high %v452_v63, %v464_v0 }
 0x304   : > { %3025 = vmatprep.subr.bf16.mxu1 %v4898_v6  ;;  %3271 = vmatprep.subr.bf16.mxu0 %v4910_v7  ;;  %v470_v6 = vld [vmem:[#allocation3 + $0x3e8] sm:$0xff] }
 0x305   : > { %v482_v7 = vld [vmem:[#allocation3 + $0x448] sm:$0xff] }
 0x306   : > { %v4707_v18 = vcombine.low %v470_v6, %v482_v7 }
 0x30b   : > { %3026 = vmatpush1.bf16.xpose.msra.mxu1 %v4897_v13  ;;  %3272 = vmatpush1.bf16.xpose.msra.mxu0 %v4909_v45  ;;  %v4708_v13 = vcombine.high %v470_v6, %v482_v7  ;;  %v4720_v45 = vcombine.high %v476_v9, %v488_v10 }
 0x30c   : > { %3027 = vmatprep.subr.bf16.mxu1 %v4922_v36  ;;  %3273 = vmatprep.subr.bf16.mxu0 %v4934_v14  ;;  %v494_v36 = vld [vmem:[#allocation3 + $0x4a8] sm:$0xff] }
 0x30d   : > { %v506_v14 = vld [vmem:[#allocation3 + $0x508] sm:$0xff] }
 0x30e   : > { %v4731_v24 = vcombine.low %v494_v36, %v506_v14 }
 0x313   : > { %3028 = vmatpush1.bf16.xpose.msra.mxu1 %v4921_v19  ;;  %3274 = vmatpush1.bf16.xpose.msra.mxu0 %v4933_v46  ;;  %v4732_v19 = vcombine.high %v494_v36, %v506_v14  ;;  %v4744_v46 = vcombine.high %v500_v16, %v512_v17 }
 0x314   : > { %3029 = vmatprep.subr.bf16.mxu1 %v4946_v20  ;;  %3275 = vmatprep.subr.bf16.mxu0 %v4958_v21  ;;  %v518_v20 = vld [vmem:[#allocation3 + $0x568] sm:$0xff] }
 0x315   : > { %v530_v21 = vld [vmem:[#allocation3 + $0x5c8] sm:$0xff] }
 0x316   : > { %v4755_v38 = vcombine.low %v518_v20, %v530_v21 }
 0x31b   : > { %3030 = vmatpush1.bf16.xpose.msra.mxu1 %v4945_v28  ;;  %3276 = vmatpush1.bf16.xpose.msra.mxu0 %v4957_v8  ;;  %v4756_v28 = vcombine.high %v518_v20, %v530_v21  ;;  %v4768_v8 = vcombine.high %v524_v22, %v536_v23 }
 0x31c   : > { %3040 = vmatprep.subr.bf16.mxu1 %v4588_v29  ;;  %3286 = vmatprep.subr.bf16.mxu0 %v4600_v30  ;;  %v542_v29 = vld [vmem:[#allocation3 + $0x628] sm:$0xff] }
 0x31d   : > { %v554_v30 = vld [vmem:[#allocation3 + $0x688] sm:$0xff] }
 0x31e   : > { %v4779_v15 = vcombine.low %v542_v29, %v554_v30 }
 0x322   : > { %3032 = vmatmul.mubr.bf16.vlgmr.msra.gmra.mrb[0].mxu1 %v6051_v34  ;;  %3278 = vmatmul.mubr.bf16.vlgmr.msra.gmra.mrb[0].mxu0 %v6055_v42 }
 0x323   : > { %3041 = vmatpush1.bf16.xpose.msra.mxu1 %v4587_v41  ;;  %3287 = vmatpush1.bf16.xpose.msra.mxu0 %v4599_v43  ;;  %v4780_v41 = vcombine.high %v542_v29, %v554_v30  ;;  %v4792_v43 = vcombine.high %v548_v32, %v560_v33 }
 0x324   : > { %3042 = vmatprep.subr.bf16.mxu1 %v4612_v39  ;;  %3288 = vmatprep.subr.bf16.mxu0 %v4624_v48  ;;  %v566_v39 = vld [vmem:[#allocation3 + $0x6e8] sm:$0xff] }
 0x325   : > { %3072 = vmatprep.mubr.bf16.mxu1 %v840_v44  ;;  %3318 = vmatprep.mubr.bf16.mxu0 %v890_v50  ;;  %v578_v48 = vld [vmem:[#allocation3 + $0x748] sm:$0xff]  ;;  %v572_v44 = vld [vmem:[#allocation3 + $0x718] sm:$0xff] }
 0x326   : > { %v584_v50 = vld [vmem:[#allocation3 + $0x778] sm:$0xff]  ;;  %v4804_v47 = vcombine.high %v566_v39, %v578_v48  ;;  %v4803_v4 = vcombine.low %v566_v39, %v578_v48  ;;  %v733_v39 = vsub.s32 0, %v5933_v27  ;;  %v729_v48 = vld [vmem:[#allocation6] sm:$0x3] }
 0x327   : > { %v4816_v49 = vcombine.high %v572_v44, %v584_v50  ;;  %v4815_v54 = vcombine.low %v572_v44, %v584_v50  ;;  %v737_v44 = vsub.s32 1, %v5933_v27 }
 0x328   : > { %v734_v50 = vrot.slane %v729_v48, %v733_v39 }
 0x32b   : > { %3043 = vmatpush1.bf16.xpose.msra.mxu1 %v4611_v52  ;;  %3289 = vmatpush1.bf16.xpose.msra.mxu0 %v4623_v51  ;;  %v590_v52 = vld [vmem:[#allocation3 + $0x7a8] sm:$0xff] }
 0x32c   : > { %3044 = vmatprep.subr.bf16.mxu1 %v4636_v26  ;;  %3290 = vmatprep.subr.bf16.mxu0 %v4648_v53  ;;  %v602_v51 = vld [vmem:[#allocation3 + $0x808] sm:$0xff]  ;;  %v596_v26 = vld [vmem:[#allocation3 + $0x7d8] sm:$0xff] }
 0x32d   : > { %v608_v53 = vld [vmem:[#allocation3 + $0x838] sm:$0xff]  ;;  %v4828_v55 = vcombine.high %v590_v52, %v602_v51  ;;  %v4827_v61 = vcombine.low %v590_v52, %v602_v51 }
 0x32e   : > { %v4840_v56 = vcombine.high %v596_v26, %v608_v53  ;;  %v4839_v62 = vcombine.low %v596_v26, %v608_v53 }
 0x333   : > { %3045 = vmatpush1.bf16.xpose.msra.mxu1 %v4635_v57  ;;  %3291 = vmatpush1.bf16.xpose.msra.mxu0 %v4647_v58  ;;  %v614_v57 = vld [vmem:[#allocation3 + $0x868] sm:$0xff] }
 0x334   : > { %3046 = vmatprep.subr.bf16.mxu1 %v4660_v59  ;;  %3292 = vmatprep.subr.bf16.mxu0 %v4672_v37  ;;  %v626_v58 = vld [vmem:[#allocation3 + $0x8c8] sm:$0xff]  ;;  %v620_v59 = vld [vmem:[#allocation3 + $0x898] sm:$0xff] }
 0x335   : > { %v632_v37 = vld [vmem:[#allocation3 + $0x8f8] sm:$0xff]  ;;  %v4852_v63 = vcombine.high %v614_v57, %v626_v58  ;;  %v4851_v6 = vcombine.low %v614_v57, %v626_v58 }
 0x336   : > { %v4864_v0 = vcombine.high %v620_v59, %v632_v37  ;;  %v4863_v7 = vcombine.low %v620_v59, %v632_v37 }
 0x33b   : > { %3047 = vmatpush1.bf16.xpose.msra.mxu1 %v4659_v1  ;;  %3293 = vmatpush1.bf16.xpose.msra.mxu0 %v4671_v2  ;;  %v638_v1 = vld [vmem:[#allocation3 + $0x928] sm:$0xff] }
 0x33c   : > { %3048 = vmatprep.subr.bf16.mxu1 %v4684_v3  ;;  %3294 = vmatprep.subr.bf16.mxu0 %v4696_v5  ;;  %v650_v2 = vld [vmem:[#allocation3 + $0x988] sm:$0xff]  ;;  %v644_v3 = vld [vmem:[#allocation3 + $0x958] sm:$0xff] }
 0x33d   : > { %v656_v5 = vld [vmem:[#allocation3 + $0x9b8] sm:$0xff]  ;;  %v4876_v9 = vcombine.high %v638_v1, %v650_v2  ;;  %v4875_v36 = vcombine.low %v638_v1, %v650_v2 }
 0x33e   : > { %v4888_v10 = vcombine.high %v644_v3, %v656_v5  ;;  %v4887_v14 = vcombine.low %v644_v3, %v656_v5 }
 0x343   : > { %3049 = vmatpush1.bf16.xpose.msra.mxu1 %v4683_v11  ;;  %3295 = vmatpush1.bf16.xpose.msra.mxu0 %v4695_v12  ;;  %v662_v11 = vld [vmem:[#allocation3 + $0x9e8] sm:$0xff] }
 0x344   : > { %3050 = vmatprep.subr.bf16.mxu1 %v4708_v13  ;;  %3296 = vmatprep.subr.bf16.mxu0 %v4720_v45  ;;  %v674_v12 = vld [vmem:[#allocation3 + $0xa48] sm:$0xff]  ;;  %v668_v13 = vld [vmem:[#allocation3 + $0xa18] sm:$0xff] }
 0x345   : > { %v680_v45 = vld [vmem:[#allocation3 + $0xa78] sm:$0xff]  ;;  %v4900_v16 = vcombine.high %v662_v11, %v674_v12  ;;  %v4899_v20 = vcombine.low %v662_v11, %v674_v12 }
 0x346   : > { %v4912_v17 = vcombine.high %v668_v13, %v680_v45  ;;  %v4911_v21 = vcombine.low %v668_v13, %v680_v45 }
 0x34b   : > { %3051 = vmatpush1.bf16.xpose.msra.mxu1 %v4707_v18  ;;  %3297 = vmatpush1.bf16.xpose.msra.mxu0 %v4719_v31  ;;  %v686_v18 = vld [vmem:[#allocation3 + $0xaa8] sm:$0xff] }
 0x34c   : > { %3052 = vmatprep.subr.bf16.mxu1 %v4732_v19  ;;  %3298 = vmatprep.subr.bf16.mxu0 %v4744_v46  ;;  %v698_v31 = vld [vmem:[#allocation3 + $0xb08] sm:$0xff]  ;;  %v692_v19 = vld [vmem:[#allocation3 + $0xad8] sm:$0xff] }
 0x34d   : > { %v704_v46 = vld [vmem:[#allocation3 + $0xb38] sm:$0xff]  ;;  %v4924_v22 = vcombine.high %v686_v18, %v698_v31  ;;  %v4923_v29 = vcombine.low %v686_v18, %v698_v31 }
 0x34e   : > { %v4936_v23 = vcombine.high %v692_v19, %v704_v46  ;;  %v4935_v30 = vcombine.low %v692_v19, %v704_v46 }
 0x353   : > { %3053 = vmatpush1.bf16.xpose.msra.mxu1 %v4731_v24  ;;  %3299 = vmatpush1.bf16.xpose.msra.mxu0 %v4743_v25  ;;  %v710_v24 = vld [vmem:[#allocation3 + $0xb68] sm:$0xff] }
 0x354   : > { %3054 = vmatprep.subr.bf16.mxu1 %v4756_v28  ;;  %3300 = vmatprep.subr.bf16.mxu0 %v4768_v8  ;;  %v722_v25 = vld [vmem:[#allocation3 + $0xbc8] sm:$0xff]  ;;  %v716_v28 = vld [vmem:[#allocation3 + $0xb98] sm:$0xff] }
 0x355   : > { %v728_v8 = vld [vmem:[#allocation3 + $0xbf8] sm:$0xff]  ;;  %v4948_v32 = vcombine.high %v710_v24, %v722_v25 }
 0x356   : > { %v4960_v33 = vcombine.high %v716_v28, %v728_v8 }
 0x35b   : > { %3055 = vmatpush1.bf16.xpose.msra.mxu1 %v4755_v38  ;;  %3301 = vmatpush1.bf16.xpose.msra.mxu0 %v4767_v40  ;;  %v4947_v38 = vcombine.low %v710_v24, %v722_v25  ;;  %v4959_v40 = vcombine.low %v716_v28, %v728_v8 }
 0x35c   : > { %3056 = vmatprep.subr.bf16.mxu1 %v4780_v41  ;;  %3302 = vmatprep.subr.bf16.mxu0 %v4792_v43  ;;  %v838_v41 = vcombine.high %v6051_v34, %v6051_v34  ;;  %v888_v43 = vcombine.high %v6055_v42, %v6055_v42 }
 0x363   : > { %3057 = vmatpush1.bf16.xpose.msra.mxu1 %v4779_v15  ;;  %3303 = vmatpush1.bf16.xpose.msra.mxu0 %v4791_v60  ;;  %v738_v15 = vrot.slane %v729_v48, %v737_v44 }
 0x364   : > { %3058 = vmatprep.subr.bf16.mxu1 %v4804_v47  ;;  %3304 = vmatprep.subr.bf16.mxu0 %v4816_v49 }
 0x36b   : > { %3059 = vmatpush1.bf16.xpose.msra.mxu1 %v4803_v4  ;;  %3305 = vmatpush1.bf16.xpose.msra.mxu0 %v4815_v54 }
 0x36c   : > { %3060 = vmatprep.subr.bf16.mxu1 %v4828_v55  ;;  %3306 = vmatprep.subr.bf16.mxu0 %v4840_v56 }
 0x373   : > { %3061 = vmatpush1.bf16.xpose.msra.mxu1 %v4827_v61  ;;  %3307 = vmatpush1.bf16.xpose.msra.mxu0 %v4839_v62 }
 0x374   : > { %3062 = vmatprep.subr.bf16.mxu1 %v4852_v63  ;;  %3308 = vmatprep.subr.bf16.mxu0 %v4864_v0 }
 0x37b   : > { %3063 = vmatpush1.bf16.xpose.msra.mxu1 %v4851_v6  ;;  %3309 = vmatpush1.bf16.xpose.msra.mxu0 %v4863_v7 }
 0x37c   : > { %3064 = vmatprep.subr.bf16.mxu1 %v4876_v9  ;;  %3310 = vmatprep.subr.bf16.mxu0 %v4888_v10 }
 0x383   : > { %3065 = vmatpush1.bf16.xpose.msra.mxu1 %v4875_v36  ;;  %3311 = vmatpush1.bf16.xpose.msra.mxu0 %v4887_v14 }
 0x384   : > { %3066 = vmatprep.subr.bf16.mxu1 %v4900_v16  ;;  %3312 = vmatprep.subr.bf16.mxu0 %v4912_v17 }
 0x38b   : > { %3067 = vmatpush1.bf16.xpose.msra.mxu1 %v4899_v20  ;;  %3313 = vmatpush1.bf16.xpose.msra.mxu0 %v4911_v21 }
 0x38c   : > { %3068 = vmatprep.subr.bf16.mxu1 %v4924_v22  ;;  %3314 = vmatprep.subr.bf16.mxu0 %v4936_v23 }
 0x393   : > { %3069 = vmatpush1.bf16.xpose.msra.mxu1 %v4923_v29  ;;  %3315 = vmatpush1.bf16.xpose.msra.mxu0 %v4935_v30 }
 0x394   : > { %3070 = vmatprep.subr.bf16.mxu1 %v4948_v32  ;;  %3316 = vmatprep.subr.bf16.mxu0 %v4960_v33 }
 0x39b   : > { %3071 = vmatpush1.bf16.xpose.msra.mxu1 %v4947_v38  ;;  %3317 = vmatpush1.bf16.xpose.msra.mxu0 %v4959_v40 }
 0x3a2   : > { %3073 = vmatmul.mubr.bf16.vlgmr.msra.gmra.mrb[0].mxu1 %v838_v41  ;;  %3319 = vmatmul.mubr.bf16.vlgmr.msra.gmra.mrb[0].mxu0 %v888_v43 }
 0x475   : > { %v3074_v60 = vpop.f32.mrb[0].mxu1  ;;  %v3320_v49 = vpop.f32.mrb[0].mxu0 }
 0x476   : > { %v5101_v47 = vadd.f32 %v3074_v60, %v734_v50  ;;  %v3076_v52 = vpop.f32.mrb[1].mxu1  ;;  %v3322_v26 = vpop.f32.mrb[1].mxu0 }
 0x477   : > { %v5103_v51 = vadd.f32 %v3076_v52, %v738_v15  ;;  %v3078_v53 = vpop.f32.mrb[2].mxu1  ;;  %v3324_v4 = vpop.f32.mrb[2].mxu0 }
 0x478   : > { %v5102_v34 = vadd.f32 %v5101_v47, %v3320_v49  ;;  %v3079_v54 = vpop.f32.mrb[3].mxu1  ;;  %v3325_v55 = vpop.f32.mrb[3].mxu0 }
 0x479   : > { %v5104_v42 = vadd.f32 %v5103_v51, %v3322_v26 }
 0x47a   : > { %v3329_v56 = vmul.f32 0.70710677, %v5102_v34  ;;  %v3327_v59 = vmul.f32 0.5, %v5102_v34 }
 0x47b   : > { %v3330_v57 = vmul.f32 0.70710677, %v5104_v42  ;;  %v3328_v61 = vmul.f32 0.5, %v5104_v42 }
 0x47c   : > { %5243 = verf.f32 %v3329_v56 }
 0x47d   : > { %5245 = verf.f32 %v3330_v57 }
 0x486   : > { %v5244_v58 = vpop.eup %5243 }
 0x487   : > { %v5246_v27 = vpop.eup %5245  ;;  %v3333_v37 = vadd.f32 1.0, %v5244_v58 }
 0x488   : > { %v3334_v62 = vadd.f32 1.0, %v5246_v27 }
 0x489   : > { %v3335_v63 = vmul.f32 %v3333_v37, %v3327_v59 }
 0x48a   : > { %v3336_v0 = vmul.f32 %v3334_v62, %v3328_v61 }
 0x48c   : > { %v4961_v1 = vpack.c.bf16 %v3336_v0, %v3335_v63 }
 0x48e   : > { %v3348_v2 = vrot.slane %v4961_v1, %v5936_v35 }
 0x490   : > { %4962 = vst.sshfl [vmem:[#allocation2] sm:$0x5 pattern:$0x73625140] %v3348_v2 }
 0x491 PF: > { %v5248_v3 = vld [vmem:[%s5920_s3 + $0x4] ss:$8 sps:$4 sm:$0xff]   ;;  %v5252_v6 = vld [vmem:[%s5920_s3] ss:$8 sps:$4 sm:$0xff]   ;;  %v5254_v35 = vld [vmem:[%s5920_s3 + $0x14] ss:$8 sps:$4 sm:$0xff]   ;;  %v3489_v22 = vlaneseq }
 0x492   : > { %v5250_v5 = vld [vmem:[%s5920_s3 + $0x104] ss:$8 sps:$4 sm:$0xff]   ;;  %4194 = vmatprep.subr.bf16.mxu0 %v5248_v3  ;;  %v5253_v7 = vld [vmem:[%s5920_s3 + $0x100] ss:$8 sps:$4 sm:$0xff]   ;;  %v5256_v9 = vld [vmem:[%s5920_s3 + $0x114] ss:$8 sps:$4 sm:$0xff]  }
 0x493   : > { %4235 = vmatprep.subr.bf16.mxu1 %v5250_v5  ;;  %4195 = vmatpush1.bf16.xpose.msra.mxu0 %v5252_v6  ;;  %v5258_v10 = vld [vmem:[%s5920_s3 + $0x10] ss:$8 sps:$4 sm:$0xff]   ;;  %v5260_v12 = vld [vmem:[%s5920_s3 + $0x24] ss:$8 sps:$4 sm:$0xff]   ;;  %v5264_v45 = vld [vmem:[%s5920_s3 + $0x20] ss:$8 sps:$4 sm:$0xff]  }
 0x494   : > { %4236 = vmatpush1.bf16.xpose.msra.mxu1 %v5253_v7  ;;  %4196 = vmatprep.subr.bf16.mxu0 %v5254_v35  ;;  %v5259_v11 = vld [vmem:[%s5920_s3 + $0x110] ss:$8 sps:$4 sm:$0xff]   ;;  %v5262_v13 = vld [vmem:[%s5920_s3 + $0x124] ss:$8 sps:$4 sm:$0xff]   ;;  %v5265_v36 = vld [vmem:[%s5920_s3 + $0x120] ss:$8 sps:$4 sm:$0xff]  }
 0x495   : > { %4237 = vmatprep.subr.bf16.mxu1 %v5256_v9  ;;  %v5266_v14 = vld [vmem:[%s5920_s3 + $0x34] ss:$8 sps:$4 sm:$0xff]   ;;  %v5270_v17 = vld [vmem:[%s5920_s3 + $0x30] ss:$8 sps:$4 sm:$0xff]   ;;  %v5272_v31 = vld [vmem:[%s5920_s3 + $0x44] ss:$8 sps:$4 sm:$0xff]  }
 0x496   : > { %v5268_v16 = vld [vmem:[%s5920_s3 + $0x134] ss:$8 sps:$4 sm:$0xff]   ;;  %v5271_v18 = vld [vmem:[%s5920_s3 + $0x130] ss:$8 sps:$4 sm:$0xff]   ;;  %v5274_v19 = vld [vmem:[%s5920_s3 + $0x144] ss:$8 sps:$4 sm:$0xff]  }
 0x497   : > { %v5276_v46 = vld [vmem:[%s5920_s3 + $0x40] ss:$8 sps:$4 sm:$0xff]   ;;  %v5278_v21 = vld [vmem:[%s5920_s3 + $0x54] ss:$8 sps:$4 sm:$0xff]   ;;  %v5658_v23 = vmov 1966171168  }
 0x498   : > { %v5277_v20 = vld [vmem:[%s5920_s3 + $0x140] ss:$8 sps:$4 sm:$0xff]   ;;  %v3539_v24 = vunpack.c.l.s4 %v5658_v23  ;;  %v5280_v25 = vld [vmem:[%s5920_s3 + $0x154] ss:$8 sps:$4 sm:$0xff]   ;;  %v6092_v28 = vshrl.u32 %v3489_v22, 7  ;;  %s6325_s30 = sld [smem:[#allocation16_spill]] }
 0x499   : > { %v5282_v29 = vld [vmem:[%s5920_s3 + $0x50] ss:$8 sps:$4 sm:$0xff]   ;;  %v5284_v32 = vld [vmem:[%s5920_s3 + $0x64] ss:$8 sps:$4 sm:$0xff]   ;;  %v5288_v48 = vld [vmem:[%s5920_s3 + $0x60] ss:$8 sps:$4 sm:$0xff]  }
 0x49a   : > { %v3540_v8 = vunpack.c.0.s8 %v3539_v24  ;;  %v5283_v30 = vld [vmem:[%s5920_s3 + $0x150] ss:$8 sps:$4 sm:$0xff]   ;;  %v5286_v38 = vld [vmem:[%s5920_s3 + $0x164] ss:$8 sps:$4 sm:$0xff]   ;;  %v5289_v44 = vld [vmem:[%s5920_s3 + $0x160] ss:$8 sps:$4 sm:$0xff]  }
 0x49b   : > { %4197 = vmatpush1.bf16.xpose.msra.mxu0 %v5258_v10  ;;  %v4963_v40 = vld.sshfl [vmem:[#allocation2] sm:$0x11 pattern:$0x75316420]  ;;  %v5294_v60 = vld [vmem:[%s5920_s3 + $0x70] ss:$8 sps:$4 sm:$0xff]  }
 0x49c   : > { %4238 = vmatpush1.bf16.xpose.msra.mxu1 %v5259_v11  ;;  %4198 = vmatprep.subr.bf16.mxu0 %v5260_v12  ;;  %v3543_v33 = vsub.s32 %v3540_v8, %v6092_v28  ;;  %v3537_v41 = vcombine.high %v4963_v40, %v4963_v40  ;;  %v5290_v50 = vld [vmem:[%s5920_s3 + $0x74] ss:$8 sps:$4 sm:$0xff]   ;;  %v5295_v47 = vld [vmem:[%s5920_s3 + $0x170] ss:$8 sps:$4 sm:$0xff]   ;;  %v5296_v49 = vld [vmem:[%s5920_s3 + $0x84] ss:$8 sps:$4 sm:$0xff]  }
 0x49d   : > { %4239 = vmatprep.subr.bf16.mxu1 %v5262_v13  ;;  %v5292_v15 = vld [vmem:[%s5920_s3 + $0x174] ss:$8 sps:$4 sm:$0xff]   ;;  %v5298_v52 = vld [vmem:[%s5920_s3 + $0x184] ss:$8 sps:$4 sm:$0xff]   ;;  %v5300_v51 = vld [vmem:[%s5920_s3 + $0x80] ss:$8 sps:$4 sm:$0xff]  }
 0x49e   : > { %v6099_v43 = vrot.slane %v4963_v40, %v3543_v33  ;;  %v6101_v39 = vrot.slane %v3537_v41, %v3543_v33  ;;  %v5301_v26 = vld [vmem:[%s5920_s3 + $0x180] ss:$8 sps:$4 sm:$0xff]   ;;  %v5302_v53 = vld [vmem:[%s5920_s3 + $0x94] ss:$8 sps:$4 sm:$0xff]   ;;  %v5306_v4 = vld [vmem:[%s5920_s3 + $0x90] ss:$8 sps:$4 sm:$0xff]  }
 0x49f   : > { %v5304_v34 = vld [vmem:[%s5920_s3 + $0x194] ss:$8 sps:$4 sm:$0xff]   ;;  %v5307_v54 = vld [vmem:[%s5920_s3 + $0x190] ss:$8 sps:$4 sm:$0xff]   ;;  %v5308_v42 = vld [vmem:[%s5920_s3 + $0xa4] ss:$8 sps:$4 sm:$0xff]  }
 0x4a0   : > { %4226 = vmatprep.mubr.bf16.mxu0 %v6101_v39  ;;  %4267 = vmatprep.mubr.bf16.mxu1 %v6101_v39  ;;  %v5310_v55 = vld [vmem:[%s5920_s3 + $0x1a4] ss:$8 sps:$4 sm:$0xff]   ;;  %v5312_v56 = vld [vmem:[%s5920_s3 + $0xa0] ss:$8 sps:$4 sm:$0xff]   ;;  %v5314_v58 = vld [vmem:[%s5920_s3 + $0xb4] ss:$8 sps:$4 sm:$0xff]  }
 0x4a1   : > { %v5313_v57 = vld [vmem:[%s5920_s3 + $0x1a0] ss:$8 sps:$4 sm:$0xff]   ;;  %v5316_v27 = vld [vmem:[%s5920_s3 + $0x1b4] ss:$8 sps:$4 sm:$0xff]   ;;  %v5318_v59 = vld [vmem:[%s5920_s3 + $0xb0] ss:$8 sps:$4 sm:$0xff]  }
 0x4a2   : > { %v5319_v37 = vld [vmem:[%s5920_s3 + $0x1b0] ss:$8 sps:$4 sm:$0xff]   ;;  %v5320_v61 = vld [vmem:[%s5920_s3 + $0xc4] ss:$8 sps:$4 sm:$0xff]   ;;  %v5324_v63 = vld [vmem:[%s5920_s3 + $0xc0] ss:$8 sps:$4 sm:$0xff]  }
 0x4a3   : > { %4199 = vmatpush1.bf16.xpose.msra.mxu0 %v5264_v45  ;;  %v5322_v62 = vld [vmem:[%s5920_s3 + $0x1c4] ss:$8 sps:$4 sm:$0xff]   ;;  %v5325_v0 = vld [vmem:[%s5920_s3 + $0x1c0] ss:$8 sps:$4 sm:$0xff]   ;;  %v5326_v1 = vld [vmem:[%s5920_s3 + $0xd4] ss:$8 sps:$4 sm:$0xff]  }
 0x4a4   : > { %4240 = vmatpush1.bf16.xpose.msra.mxu1 %v5265_v36  ;;  %4200 = vmatprep.subr.bf16.mxu0 %v5266_v14  ;;  %v5328_v2 = vld [vmem:[%s5920_s3 + $0x1d4] ss:$8 sps:$4 sm:$0xff]   ;;  %v5330_v3 = vld [vmem:[%s5920_s3 + $0xd0] ss:$8 sps:$4 sm:$0xff]   ;;  %v5332_v6 = vld [vmem:[%s5920_s3 + $0xe4] ss:$8 sps:$4 sm:$0xff]  }
 0x4a5   : > { %4241 = vmatprep.subr.bf16.mxu1 %v5268_v16  ;;  %v5331_v5 = vld [vmem:[%s5920_s3 + $0x1d0] ss:$8 sps:$4 sm:$0xff]   ;;  %v5334_v7 = vld [vmem:[%s5920_s3 + $0x1e4] ss:$8 sps:$4 sm:$0xff]   ;;  %v5336_v35 = vld [vmem:[%s5920_s3 + $0xe0] ss:$8 sps:$4 sm:$0xff]  }
 0x4a6   : > { %v5337_v9 = vld [vmem:[%s5920_s3 + $0x1e0] ss:$8 sps:$4 sm:$0xff]   ;;  %v5338_v10 = vld [vmem:[%s5920_s3 + $0xf4] ss:$8 sps:$4 sm:$0xff]   ;;  %v5342_v12 = vld [vmem:[%s5920_s3 + $0xf0] ss:$8 sps:$4 sm:$0xff]  }
 0x4a7   : > { %v5340_v11 = vld [vmem:[%s5920_s3 + $0x1f4] ss:$8 sps:$4 sm:$0xff]   ;;  %v5343_v13 = vld [vmem:[%s5920_s3 + $0x1f0] ss:$8 sps:$4 sm:$0xff]   ;;  %v5346_v45 = vld [vmem:[%s5920_s3 + $0x204] ss:$8 sps:$4 sm:$0xff]  }
 0x4a8   : > { %v5349_v36 = vld [vmem:[%s5920_s3 + $0x304] ss:$8 sps:$4 sm:$0xff]   ;;  %v5344_v14 = vld [vmem:[%s5920_s3 + $0x200] ss:$8 sps:$4 sm:$0xff]   ;;  %v5364_v23 = vld [vmem:[%s5920_s3 + $0x234] ss:$8 sps:$4 sm:$0xff]  }
 0x4a9   : > { %v5347_v16 = vld [vmem:[%s5920_s3 + $0x300] ss:$8 sps:$4 sm:$0xff]   ;;  %v5367_v24 = vld [vmem:[%s5920_s3 + $0x334] ss:$8 sps:$4 sm:$0xff]   ;;  %v5365_v8 = vld [vmem:[%s5920_s3 + $0x330] ss:$8 sps:$4 sm:$0xff]  }
 0x4aa   : > { %v5359_v22 = vld [vmem:[%s5920_s3 + $0x320] ss:$8 sps:$4 sm:$0xff]   ;;  %v5379_v40 = vld [vmem:[%s5920_s3 + $0x354] ss:$8 sps:$4 sm:$0xff]   ;;  %v5374_v41 = vld [vmem:[%s5920_s3 + $0x250] ss:$8 sps:$4 sm:$0xff]  }
 0x4ab   : > { %4201 = vmatpush1.bf16.xpose.msra.mxu0 %v5270_v17  ;;  %v5352_v17 = vld [vmem:[%s5920_s3 + $0x214] ss:$8 sps:$4 sm:$0xff]   ;;  %v5371_v33 = vld [vmem:[%s5920_s3 + $0x340] ss:$8 sps:$4 sm:$0xff]   ;;  %s5100_s18 = sshll.u32 %s5639_s21, 8  ;;  %s4421_s25 = sshll.u32 %s5930_s17, 4  ;;  %s6231_s25 = int_to_ptr.vmem [resolvable:$true] %s4421_s25 }
 0x4ac   : > { %4242 = vmatpush1.bf16.xpose.msra.mxu1 %v5271_v18  ;;  %4202 = vmatprep.subr.bf16.mxu0 %v5272_v31  ;;  %v5355_v18 = vld [vmem:[%s5920_s3 + $0x314] ss:$8 sps:$4 sm:$0xff]   ;;  %v5350_v31 = vld [vmem:[%s5920_s3 + $0x210] ss:$8 sps:$4 sm:$0xff]   ;;  %s6326_s6 = sld [smem:[#allocation20_spill]]  ;;  %s5557_s14 = scalar_lea.vmem %s6231_s25, 256 }
 0x4ad   : > { %4243 = vmatprep.subr.bf16.mxu1 %v5274_v19  ;;  %v5353_v19 = vld [vmem:[%s5920_s3 + $0x310] ss:$8 sps:$4 sm:$0xff]   ;;  %p5558_p13 = scmp.ne.s32.totalorder %s6231_s25, %s5557_s14  ;;  %p6327_p10 = scmp.ne.s32.totalorder %s6325_s30, 0 }
 0x4ae   : > { %s5660_s21 = smov [#allocation10]  }
 0x4af   : > { %p5559_p2 = pnand %p5558_p13, %p6327_p10  ;;  %s5561_s5 = sshll.u32 %s5660_s21, 4  ;;  %s5562_s5 = int_to_ptr.vmem [resolvable:$false] %s5561_s5 }
 0x4b0   : > { %p5564_p0 = scmp.lt.s32.totalorder %s6231_s25, %s5562_s5 }
 0x4b1   : > { %p5560_p12 = pneg %p5559_p2 }
 0x4b2   : > { %s6229_s13 = scalar_lea.hbm %s6326_s6, %s5100_s18 }
 0x4b3   : > { %4203 = vmatpush1.bf16.xpose.msra.mxu0 %v5276_v46  ;;  %v5358_v46 = vld [vmem:[%s5920_s3 + $0x224] ss:$8 sps:$4 sm:$0xff]  }
 0x4b4   : > { %4244 = vmatpush1.bf16.xpose.msra.mxu1 %v5277_v20  ;;  %4204 = vmatprep.subr.bf16.mxu0 %v5278_v21  ;;  %v5361_v20 = vld [vmem:[%s5920_s3 + $0x324] ss:$8 sps:$4 sm:$0xff]   ;;  %v5356_v21 = vld [vmem:[%s5920_s3 + $0x220] ss:$8 sps:$4 sm:$0xff]  }
 0x4b5   : > { %4245 = vmatprep.subr.bf16.mxu1 %v5280_v25  ;;  %v5362_v25 = vld [vmem:[%s5920_s3 + $0x230] ss:$8 sps:$4 sm:$0xff]  }
 0x4bb   : > { %4205 = vmatpush1.bf16.xpose.msra.mxu0 %v5282_v29  ;;  %v5370_v29 = vld [vmem:[%s5920_s3 + $0x244] ss:$8 sps:$4 sm:$0xff]  }
 0x4bc   : > { %4246 = vmatpush1.bf16.xpose.msra.mxu1 %v5283_v30  ;;  %4206 = vmatprep.subr.bf16.mxu0 %v5284_v32  ;;  %v5373_v30 = vld [vmem:[%s5920_s3 + $0x344] ss:$8 sps:$4 sm:$0xff]   ;;  %v5368_v32 = vld [vmem:[%s5920_s3 + $0x240] ss:$8 sps:$4 sm:$0xff]  }
 0x4bd   : > { %4247 = vmatprep.subr.bf16.mxu1 %v5286_v38  ;;  %v5376_v38 = vld [vmem:[%s5920_s3 + $0x254] ss:$8 sps:$4 sm:$0xff]  }
 0x4c3   : > { %4207 = vmatpush1.bf16.xpose.msra.mxu0 %v5288_v48  ;;  %v5382_v48 = vld [vmem:[%s5920_s3 + $0x264] ss:$8 sps:$4 sm:$0xff]  }
 0x4c4   : > { %4248 = vmatpush1.bf16.xpose.msra.mxu1 %v5289_v44  ;;  %4208 = vmatprep.subr.bf16.mxu0 %v5290_v50  ;;  %v5385_v44 = vld [vmem:[%s5920_s3 + $0x364] ss:$8 sps:$4 sm:$0xff]   ;;  %v5380_v50 = vld [vmem:[%s5920_s3 + $0x260] ss:$8 sps:$4 sm:$0xff]  }
 0x4c5   : > { %4249 = vmatprep.subr.bf16.mxu1 %v5292_v15  ;;  %v5383_v15 = vld [vmem:[%s5920_s3 + $0x360] ss:$8 sps:$4 sm:$0xff]  }
 0x4cb   : > { %4209 = vmatpush1.bf16.xpose.msra.mxu0 %v5294_v60  ;;  %v5388_v60 = vld [vmem:[%s5920_s3 + $0x274] ss:$8 sps:$4 sm:$0xff]  }
 0x4cc   : > { %4250 = vmatpush1.bf16.xpose.msra.mxu1 %v5295_v47  ;;  %4210 = vmatprep.subr.bf16.mxu0 %v5296_v49  ;;  %v5391_v47 = vld [vmem:[%s5920_s3 + $0x374] ss:$8 sps:$4 sm:$0xff]   ;;  %v5386_v49 = vld [vmem:[%s5920_s3 + $0x270] ss:$8 sps:$4 sm:$0xff]  }
 0x4cd   : > { %4251 = vmatprep.subr.bf16.mxu1 %v5298_v52  ;;  %v5389_v52 = vld [vmem:[%s5920_s3 + $0x370] ss:$8 sps:$4 sm:$0xff]  }
 0x4d3   : > { %4211 = vmatpush1.bf16.xpose.msra.mxu0 %v5300_v51  ;;  %v5394_v51 = vld [vmem:[%s5920_s3 + $0x284] ss:$8 sps:$4 sm:$0xff]  }
 0x4d4   : > { %4252 = vmatpush1.bf16.xpose.msra.mxu1 %v5301_v26  ;;  %4212 = vmatprep.subr.bf16.mxu0 %v5302_v53  ;;  %v5397_v26 = vld [vmem:[%s5920_s3 + $0x384] ss:$8 sps:$4 sm:$0xff]   ;;  %v5392_v53 = vld [vmem:[%s5920_s3 + $0x280] ss:$8 sps:$4 sm:$0xff]  }
 0x4d5   : > { %4253 = vmatprep.subr.bf16.mxu1 %v5304_v34  ;;  %v5395_v34 = vld [vmem:[%s5920_s3 + $0x380] ss:$8 sps:$4 sm:$0xff]  }
 0x4db   : > { %4213 = vmatpush1.bf16.xpose.msra.mxu0 %v5306_v4  ;;  %v5400_v4 = vld [vmem:[%s5920_s3 + $0x294] ss:$8 sps:$4 sm:$0xff]  }
 0x4dc   : > { %4254 = vmatpush1.bf16.xpose.msra.mxu1 %v5307_v54  ;;  %4214 = vmatprep.subr.bf16.mxu0 %v5308_v42  ;;  %v5403_v54 = vld [vmem:[%s5920_s3 + $0x394] ss:$8 sps:$4 sm:$0xff]   ;;  %v5398_v42 = vld [vmem:[%s5920_s3 + $0x290] ss:$8 sps:$4 sm:$0xff]  }
 0x4dd   : > { %4255 = vmatprep.subr.bf16.mxu1 %v5310_v55  ;;  %v5401_v55 = vld [vmem:[%s5920_s3 + $0x390] ss:$8 sps:$4 sm:$0xff]  }
 0x4e3   : > { %4215 = vmatpush1.bf16.xpose.msra.mxu0 %v5312_v56  ;;  %v5406_v56 = vld [vmem:[%s5920_s3 + $0x2a4] ss:$8 sps:$4 sm:$0xff]  }
 0x4e4   : > { %4256 = vmatpush1.bf16.xpose.msra.mxu1 %v5313_v57  ;;  %4216 = vmatprep.subr.bf16.mxu0 %v5314_v58  ;;  %v5409_v57 = vld [vmem:[%s5920_s3 + $0x3a4] ss:$8 sps:$4 sm:$0xff]   ;;  %v5404_v58 = vld [vmem:[%s5920_s3 + $0x2a0] ss:$8 sps:$4 sm:$0xff]  }
 0x4e5   : > { %4257 = vmatprep.subr.bf16.mxu1 %v5316_v27  ;;  %v5407_v27 = vld [vmem:[%s5920_s3 + $0x3a0] ss:$8 sps:$4 sm:$0xff]  }
 0x4eb   : > { %4217 = vmatpush1.bf16.xpose.msra.mxu0 %v5318_v59  ;;  %v5412_v59 = vld [vmem:[%s5920_s3 + $0x2b4] ss:$8 sps:$4 sm:$0xff]  }
 0x4ec   : > { %4258 = vmatpush1.bf16.xpose.msra.mxu1 %v5319_v37  ;;  %4218 = vmatprep.subr.bf16.mxu0 %v5320_v61  ;;  %v5415_v37 = vld [vmem:[%s5920_s3 + $0x3b4] ss:$8 sps:$4 sm:$0xff]   ;;  %v5410_v61 = vld [vmem:[%s5920_s3 + $0x2b0] ss:$8 sps:$4 sm:$0xff]  }
 0x4ed   : > { %4259 = vmatprep.subr.bf16.mxu1 %v5322_v62  ;;  %v5413_v62 = vld [vmem:[%s5920_s3 + $0x3b0] ss:$8 sps:$4 sm:$0xff]  }
 0x4f3   : > { %4219 = vmatpush1.bf16.xpose.msra.mxu0 %v5324_v63  ;;  %v5418_v63 = vld [vmem:[%s5920_s3 + $0x2c4] ss:$8 sps:$4 sm:$0xff]  }
 0x4f4   : > { %4260 = vmatpush1.bf16.xpose.msra.mxu1 %v5325_v0  ;;  %4220 = vmatprep.subr.bf16.mxu0 %v5326_v1  ;;  %v5421_v0 = vld [vmem:[%s5920_s3 + $0x3c4] ss:$8 sps:$4 sm:$0xff]   ;;  %v5416_v1 = vld [vmem:[%s5920_s3 + $0x2c0] ss:$8 sps:$4 sm:$0xff]  }
 0x4f5   : > { %4261 = vmatprep.subr.bf16.mxu1 %v5328_v2  ;;  %v5419_v2 = vld [vmem:[%s5920_s3 + $0x3c0] ss:$8 sps:$4 sm:$0xff]  }
 0x4fb   : > { %4221 = vmatpush1.bf16.xpose.msra.mxu0 %v5330_v3  ;;  %v5424_v3 = vld [vmem:[%s5920_s3 + $0x2d4] ss:$8 sps:$4 sm:$0xff]  }
 0x4fc   : > { %4262 = vmatpush1.bf16.xpose.msra.mxu1 %v5331_v5  ;;  %4222 = vmatprep.subr.bf16.mxu0 %v5332_v6  ;;  %v5427_v5 = vld [vmem:[%s5920_s3 + $0x3d4] ss:$8 sps:$4 sm:$0xff]   ;;  %v5422_v6 = vld [vmem:[%s5920_s3 + $0x2d0] ss:$8 sps:$4 sm:$0xff]  }
 0x4fd   : > { %4263 = vmatprep.subr.bf16.mxu1 %v5334_v7  ;;  %v5425_v7 = vld [vmem:[%s5920_s3 + $0x3d0] ss:$8 sps:$4 sm:$0xff]  }
 0x503   : > { %4223 = vmatpush1.bf16.xpose.msra.mxu0 %v5336_v35  ;;  %v5430_v35 = vld [vmem:[%s5920_s3 + $0x2e4] ss:$8 sps:$4 sm:$0xff]  }
 0x504   : > { %4264 = vmatpush1.bf16.xpose.msra.mxu1 %v5337_v9  ;;  %4224 = vmatprep.subr.bf16.mxu0 %v5338_v10  ;;  %v5433_v9 = vld [vmem:[%s5920_s3 + $0x3e4] ss:$8 sps:$4 sm:$0xff]   ;;  %v5428_v10 = vld [vmem:[%s5920_s3 + $0x2e0] ss:$8 sps:$4 sm:$0xff]  }
 0x505   : > { %4265 = vmatprep.subr.bf16.mxu1 %v5340_v11  ;;  %v5431_v11 = vld [vmem:[%s5920_s3 + $0x3e0] ss:$8 sps:$4 sm:$0xff]  }
 0x50b   : > { %4225 = vmatpush1.bf16.xpose.msra.mxu0 %v5342_v12  ;;  %v5436_v12 = vld [vmem:[%s5920_s3 + $0x2f4] ss:$8 sps:$4 sm:$0xff]  }
 0x50c   : > { %4266 = vmatpush1.bf16.xpose.msra.mxu1 %v5343_v13  ;;  %4276 = vmatprep.subr.bf16.mxu0 %v5346_v45  ;;  %v5439_v13 = vld [vmem:[%s5920_s3 + $0x3f4] ss:$8 sps:$4 sm:$0xff]   ;;  %v5434_v45 = vld [vmem:[%s5920_s3 + $0x2f0] ss:$8 sps:$4 sm:$0xff]  }
 0x50d   : > { %4317 = vmatprep.subr.bf16.mxu1 %v5349_v36  ;;  %v5437_v36 = vld [vmem:[%s5920_s3 + $0x3f0] ss:$8 sps:$4 sm:$0xff]  }
 0x512   : > { %4227 = vmatmul.mubr.bf16.vlgmr.msra.gmra.mrb[0].mxu0 %v6099_v43 }
 0x513   : > { %4268 = vmatmul.mubr.bf16.vlgmr.msra.gmra.mrb[0].mxu1 %v6099_v43  ;;  %4277 = vmatpush1.bf16.xpose.msra.mxu0 %v5344_v14  ;;  %v3491_v14 = vsub.s32 0, %v6092_v28 }
 0x514   : > { %4318 = vmatpush1.bf16.xpose.msra.mxu1 %v5347_v16  ;;  %4278 = vmatprep.subr.bf16.mxu0 %v5352_v17  ;;  %v3499_v16 = vsub.s32 2, %v6092_v28  ;;  %v3487_v17 = vld [vmem:[%s5928_s26] sm:$0xff]  ;;  %s5563_s26 = scalar_lea.vmem %s5562_s5, 512 }
 0x515   : > { %4319 = vmatprep.subr.bf16.mxu1 %v5355_v18  ;;  %4308 = vmatprep.mubr.bf16.mxu0 %v6101_v39  ;;  %v3495_v18 = vsub.s32 1, %v6092_v28  ;;  %p5565_p1 = scmp.lt.s32.totalorder %s5563_s26, %s5557_s14 }
 0x516   : > { %4349 = vmatprep.mubr.bf16.mxu1 %v6101_v39  ;;  %v5377_v39 = vld [vmem:[%s5920_s3 + $0x350] ss:$8 sps:$4 sm:$0xff]   ;;  %s4405_s3 = scalar_lea.sflag [#allocation5], %s5917_s12 }
 0x517   : > { %p5566_p5 = por %p5565_p1, %p5564_p0 }
 0x519   : > { %p5567_p6 = pnand %p5566_p5, %p5560_p12 }
 0x51b   : > { %4279 = vmatpush1.bf16.xpose.msra.mxu0 %v5350_v31  ;;  %v5659_v31 = vmov 1983009808  }
 0x51c   : > { %4320 = vmatpush1.bf16.xpose.msra.mxu1 %v5353_v19  ;;  %4280 = vmatprep.subr.bf16.mxu0 %v5358_v46  ;;  %v4369_v19 = vunpack.c.l.s4 %v5659_v31  ;;  %v3503_v46 = vsub.s32 3, %v6092_v28 }
 0x51d   : > { %4321 = vmatprep.subr.bf16.mxu1 %v5361_v20  ;;  %v3492_v20 = vrot.slane %v3487_v17, %v3491_v14 }
 0x523   : > { %4281 = vmatpush1.bf16.xpose.msra.mxu0 %v5356_v21  ;;  %v3500_v21 = vrot.slane %v3487_v17, %v3499_v16 }
 0x524   : > { %4322 = vmatpush1.bf16.xpose.msra.mxu1 %v5359_v22  ;;  %4282 = vmatprep.subr.bf16.mxu0 %v5364_v23  ;;  %v3496_v22 = vrot.slane %v3487_v17, %v3495_v18  ;;  %v4370_v23 = vunpack.c.0.s8 %v4369_v19 }
 0x525   : > { %4323 = vmatprep.subr.bf16.mxu1 %v5367_v24  ;;  %v3504_v24 = vrot.slane %v3487_v17, %v3503_v46 }
 0x52b   : > { %4283 = vmatpush1.bf16.xpose.msra.mxu0 %v5362_v25 }
 0x52c   : > { %4324 = vmatpush1.bf16.xpose.msra.mxu1 %v5365_v8  ;;  %4284 = vmatprep.subr.bf16.mxu0 %v5370_v29 }
 0x52d   : > { %4325 = vmatprep.subr.bf16.mxu1 %v5373_v30 }
 0x533   : > { %4285 = vmatpush1.bf16.xpose.msra.mxu0 %v5368_v32 }
 0x534   : > { %4326 = vmatpush1.bf16.xpose.msra.mxu1 %v5371_v33  ;;  %4286 = vmatprep.subr.bf16.mxu0 %v5376_v38  ;;  %v4373_v38 = vsub.s32 %v4370_v23, %v6092_v28 }
 0x535   : > { %4327 = vmatprep.subr.bf16.mxu1 %v5379_v40 }
 0x53b   : > { %4287 = vmatpush1.bf16.xpose.msra.mxu0 %v5374_v41 }
 0x53c   : > { %4328 = vmatpush1.bf16.xpose.msra.mxu1 %v5377_v39  ;;  %4288 = vmatprep.subr.bf16.mxu0 %v5382_v48 }
 0x53d   : > { %4329 = vmatprep.subr.bf16.mxu1 %v5385_v44 }
 0x543   : > { %4289 = vmatpush1.bf16.xpose.msra.mxu0 %v5380_v50 }
 0x544   : > { %4330 = vmatpush1.bf16.xpose.msra.mxu1 %v5383_v15  ;;  %4290 = vmatprep.subr.bf16.mxu0 %v5388_v60 }
 0x545   : > { %4331 = vmatprep.subr.bf16.mxu1 %v5391_v47 }
 0x54b   : > { %4291 = vmatpush1.bf16.xpose.msra.mxu0 %v5386_v49 }
 0x54c   : > { %4332 = vmatpush1.bf16.xpose.msra.mxu1 %v5389_v52  ;;  %4292 = vmatprep.subr.bf16.mxu0 %v5394_v51  ;;  %v3507_v52 = vsub.s32 4, %v6092_v28  ;;  %v3515_v51 = vsub.s32 6, %v6092_v28 }
 0x54d   : > { %4333 = vmatprep.subr.bf16.mxu1 %v5397_v26  ;;  %v3511_v26 = vsub.s32 5, %v6092_v28 }
 0x553   : > { %4293 = vmatpush1.bf16.xpose.msra.mxu0 %v5392_v53  ;;  %v3519_v53 = vsub.s32 7, %v6092_v28 }
 0x554   : > { %4334 = vmatpush1.bf16.xpose.msra.mxu1 %v5395_v34  ;;  %4294 = vmatprep.subr.bf16.mxu0 %v5400_v4  ;;  %v3508_v34 = vrot.slane %v3487_v17, %v3507_v52  ;;  %v3516_v4 = vrot.slane %v3487_v17, %v3515_v51 }
 0x555   : > { %4335 = vmatprep.subr.bf16.mxu1 %v5403_v54  ;;  %v3512_v54 = vrot.slane %v3487_v17, %v3511_v26 }
 0x55b   : > { %4295 = vmatpush1.bf16.xpose.msra.mxu0 %v5398_v42  ;;  %v3520_v42 = vrot.slane %v3487_v17, %v3519_v53 }
 0x55c   : > { %4336 = vmatpush1.bf16.xpose.msra.mxu1 %v5401_v55  ;;  %4296 = vmatprep.subr.bf16.mxu0 %v5406_v56 }
 0x55d   : > { %4337 = vmatprep.subr.bf16.mxu1 %v5409_v57 }
 0x563   : > { %4297 = vmatpush1.bf16.xpose.msra.mxu0 %v5404_v58 }
 0x564   : > { %4338 = vmatpush1.bf16.xpose.msra.mxu1 %v5407_v27  ;;  %4298 = vmatprep.subr.bf16.mxu0 %v5412_v59 }
 0x565   : > { %4339 = vmatprep.subr.bf16.mxu1 %v5415_v37 }
 0x56b   : > { %4299 = vmatpush1.bf16.xpose.msra.mxu0 %v5410_v61 }
 0x56c   : > { %4340 = vmatpush1.bf16.xpose.msra.mxu1 %v5413_v62  ;;  %4300 = vmatprep.subr.bf16.mxu0 %v5418_v63 }
 0x56d   : > { %4341 = vmatprep.subr.bf16.mxu1 %v5421_v0 }
 0x573   : > { %4301 = vmatpush1.bf16.xpose.msra.mxu0 %v5416_v1 }
 0x574   : > { %4342 = vmatpush1.bf16.xpose.msra.mxu1 %v5419_v2  ;;  %4302 = vmatprep.subr.bf16.mxu0 %v5424_v3 }
 0x575   : > { %4343 = vmatprep.subr.bf16.mxu1 %v5427_v5 }
 0x57b   : > { %4303 = vmatpush1.bf16.xpose.msra.mxu0 %v5422_v6 }
 0x57c   : > { %4344 = vmatpush1.bf16.xpose.msra.mxu1 %v5425_v7  ;;  %4304 = vmatprep.subr.bf16.mxu0 %v5430_v35 }
 0x57d   : > { %4345 = vmatprep.subr.bf16.mxu1 %v5433_v9 }
 0x583   : > { %4305 = vmatpush1.bf16.xpose.msra.mxu0 %v5428_v10 }
 0x584   : > { %4346 = vmatpush1.bf16.xpose.msra.mxu1 %v5431_v11  ;;  %4306 = vmatprep.subr.bf16.mxu0 %v5436_v12 }
 0x585   : > { %4347 = vmatprep.subr.bf16.mxu1 %v5439_v13 }
 0x58b   : > { %4307 = vmatpush1.bf16.xpose.msra.mxu0 %v5434_v45 }
 0x58c   : > { %4348 = vmatpush1.bf16.xpose.msra.mxu1 %v5437_v36 }
 0x592   : > { %4309 = vmatmul.mubr.bf16.vlgmr.msra.gmra.mrb[4].mxu0 %v6099_v43 }
 0x593   : > { %4350 = vmatmul.mubr.bf16.vlgmr.msra.gmra.mrb[4].mxu1 %v6099_v43 }
 0x5e5   : > { %v4228_v25 = vpop.f32.mrb[0].mxu0 }
 0x5e6   : > { %v4269_v8 = vpop.f32.mrb[0].mxu1  ;;  %v4229_v29 = vadd.f32 %v4228_v25, %v3492_v20  ;;  %v4230_v30 = vpop.f32.mrb[1].mxu0 }
 0x5e7   : > { %v4270_v43 = vadd.f32 %v4269_v8, %v3500_v21  ;;  %v4271_v32 = vpop.f32.mrb[1].mxu1  ;;  %v4231_v33 = vadd.f32 %v4230_v30, %v3496_v22  ;;  %v4232_v41 = vpop.f32.mrb[2].mxu0 }
 0x5e8   : > { %v4272_v40 = vadd.f32 %v4271_v32, %v3504_v24  ;;  %v4273_v39 = vpop.f32.mrb[2].mxu1  ;;  %v4233_v48 = vpop.f32.mrb[3].mxu0 }
 0x5e9   : > { %v4274_v44 = vpop.f32.mrb[3].mxu1  ;;  %v4366_v50 = vcombine.low %v4229_v29, %v4231_v33 }
 0x5ea   : > { %v4367_v15 = vcombine.low %v4270_v43, %v4272_v40 }
 0x5eb   : > { %v4374_v60 = vrot.slane %v4366_v50, %v4373_v38 }
 0x5ec   : > { %v4381_v47 = vrot.slane %v4367_v15, %v4373_v38 }
 0x5ee   : > { %v4382_v49 = vcombine.low %v4374_v60, %v4381_v47 }
 0x5f0   : > { %4402 = vst [vmem:[%s5930_s17] sm:$0xff] %v4382_v49 }
 0x665   : > { %v4310_v55 = vpop.f32.mrb[4].mxu0 }
 0x666   : > { %v4351_v56 = vpop.f32.mrb[4].mxu1  ;;  %v4311_v57 = vadd.f32 %v4310_v55, %v3508_v34  ;;  %v4312_v27 = vpop.f32.mrb[5].mxu0 }
 0x667   : > { %v4352_v58 = vadd.f32 %v4351_v56, %v3516_v4  ;;  %v4353_v59 = vpop.f32.mrb[5].mxu1  ;;  %v4313_v37 = vadd.f32 %v4312_v27, %v3512_v54  ;;  %v4314_v62 = vpop.f32.mrb[6].mxu0 }
 0x668   : > { %v4354_v61 = vadd.f32 %v4353_v59, %v3520_v42  ;;  %v4355_v63 = vpop.f32.mrb[6].mxu1  ;;  %v4315_v28 = vpop.f32.mrb[7].mxu0 }
 0x669   : > { %v4356_v0 = vpop.f32.mrb[7].mxu1  ;;  %v4383_v1 = vcombine.low %v4311_v57, %v4313_v37 }
 0x66a   : > { %v4384_v2 = vcombine.low %v4352_v58, %v4354_v61 }
 0x66b   : > { %v4391_v3 = vrot.slane %v4383_v1, %v4373_v38 }
 0x66c   : > { %v4398_v5 = vrot.slane %v4384_v2, %v4373_v38 }
 0x66e   : > { %v4399_v6 = vcombine.low %v4391_v3, %v4398_v5 }
 0x670   : > { %4403 = vst [vmem:[%s5930_s17 + $0x8] sm:$0xff] %v4399_v6 }
 0x671   : > { %5570 = shalt.err (!%p5567_p6)
}
 0x672   : > { %s5571_s12 = scalar_lea.hbm %s6229_s13, 256  ;;  %s5575_s28 = scalar_lea.hbm %s6326_s6, 768 }
 0x673   : > { %p5572_p3 = scmp.ne.s32.totalorder %s6229_s13, %s5571_s12  ;;  %p5576_p4 = scmp.lt.u32.totalorder %s6229_s13, %s6326_s6 }
 0x674   : > { %p5577_p8 = scmp.lt.u32.totalorder %s5575_s28, %s5571_s12  ;;  %p5579_p13 = scmp.lt.u32.totalorder %s5571_s12, %s6229_s13 }
 0x675   : > { %p5573_p7 = pnand %p5572_p3, %p6327_p10 }
 0x676   : > { %p5578_p11 = por %p5577_p8, %p5576_p4 }
 0x677   : > { %p5574_p9 = pneg %p5573_p7 }
 0x678   : > { %p5580_p2 = por %p5579_p13, %p5578_p11 }
 0x67a   : > { %p5581_p12 = pnand %p5580_p2, %p5574_p9 }
 0x67c   : > { %5584 = shalt.err (!%p5581_p12)
}
 0x67d   : > { %5157 = dma.vmem_to_hbm [thread:$0]  (%p6327_p10), %s6231_s25, 256, %s6229_s13, %s4405_s3  }
 0x67e PF: > { %s6328_s16 = sld [smem:[#allocation15_spill]]  ;;  %s6329_s15 = sld [smem:[#allocation17_spill]] }
 0x67f   : > { %p5182_p0 = scmp.ge.s32.totalorder %s5647_s23, 2 }
 0x684   : > { %s4433_s8 = sand.u32 1, %s6328_s16   ;;  %p6330_p1 = scmp.ne.s32.totalorder %s6329_s15, 0 }
 0x685   : > { %s4434_s27 = scalar_lea.sflag [#allocation5], %s4433_s8 }
 0x686   : > { %p5174_p5 = pnand %p5182_p0, %p6330_p1 }
 0x688   : > { %5622 = dma.done.wait (!%p5174_p5), %s4434_s27, 256  }
 0x689   : > { %5624 = vsyncadd (!%p5174_p5), %s4434_s27, 4294967040  ;;  %s20_s23 = sadd.s32 1, %s5647_s23   ;;  %s6331_s18 = smov %s5631_s19 }
 0x68a   : > { %p17_p6 = scmp.ge.s32.totalorder %s20_s23, 5   ;;  %s6332_s19 = smov %s5635_s20 }
 0x68b   : > { %s6333_s20 = smov %s5820_s29  ;;  %s6334_s21 = smov %s5643_s22 }
 0x68c   : > { %s6335_s22 = smov %s6337_s11  ;;  %19 = sbr.rel (!%p17_p6) target bundleno = 10 (0xa), region = 110 }
 0x693   :  { %4439 = vsyncpa [#allocation4], 1 }
 0x694   :  { %4441 = vsyncpa [#allocation4 + $0x1], 1 }
 0x695   :  { %4442 = vsyncpa [#allocation7], 1 }
 0x696   :  { %4443 = vsyncpa [#allocation5], 1 }
 0x697   :  { %4445 = vsyncpa [#allocation5 + $0x1], 1 }

</bundles_post_ra>
